<compile_context>
chip_gen: v7x
topology: tpu7x:2x2x1
jax: 0.10.0
libtpu: 0.0.40
codegen_flags: <defaults>
</compile_context>

<pallas_src>
import functools

import jax
import jax.numpy as jnp
from jax import lax
from jax.experimental import pallas as pl
from jax.experimental.pallas import tpu as pltpu


def _fused_slab_kernel(x_ref, w1_ref, b1_ref, w2_ref, b2_ref, o_ref, *, k, H, W):
    """One batch element, channel-major / lane-dense.

       x_ref:  (1, C1, HW)      flat NCHW input tile (HW = H*W on lanes)
       w1_ref: (k*k, C2, C1)    per-tap weights, tap-major
       b1_ref: (C2, 1)
       w2_ref: (k*k, C3, C2)
       b2_ref: (C3, 1)
       o_ref:  (1, C3, HW)      lane-dense output (already NCHW-flat)
    """
    p = (k - 1) // 2
    HW = H * W

    # Hoisted position ids: computed once, reused by all taps of both layers.
    flat_ids = lax.broadcasted_iota(jnp.int32, (1, HW), 1)
    if W & (W - 1) == 0:                       # power-of-two fast path (W=16)
        row_ids = flat_ids >> (W.bit_length() - 1)
        col_ids = flat_ids & (W - 1)
    else:
        row_ids = flat_ids // W
        col_ids = flat_ids % W

    def interval_mask(ids, d, extent):
        # Validity of position `ids` after a shift by `d` within [0, extent).
        if d == 0:
            return None                        # trivially valid -> no mask op
        return (ids < (extent - d)) if d > 0 else (ids >= -d)

    row_valid = [interval_mask(row_ids, kh - p, H) for kh in range(k)]
    col_valid = [interval_mask(col_ids, kw - p, W) for kw in range(k)]

    def conv_relu(x_flat, w_ref, b_ref):
        cout = b_ref.shape[0]
        acc = jnp.zeros((cout, HW), jnp.float32)
        for kh in range(k):
            dy = kh - p
            for kw in range(k):
                dx = kw - p
                off = dy * W + dx              # flat spatial shift of this tap
                shifted = (x_flat if off == 0
                           else pltpu.roll(x_flat, (-off) % HW, 1))
                rm, cm = row_valid[kh], col_valid[kw]
                if rm is not None and cm is not None:
                    mask = rm & cm
                elif rm is not None:
                    mask = rm
                else:
                    mask = cm
                if mask is not None:
                    shifted = jnp.where(mask, shifted, 0.0)
                # (Cout, Cin) @ (Cin, HW) -> (Cout, HW): lane-dense N = HW.
                acc = acc + jnp.dot(w_ref[kh * k + kw], shifted,
                                    preferred_element_type=jnp.float32)
        return jnp.maximum(acc + b_ref[...], 0.0)          # bias + ReLU fused

    x0 = x_ref[0].astype(jnp.float32)                       # (C1, HW)
    a1 = conv_relu(x0, w1_ref, b1_ref)                      # (C2, HW) in vregs
    a2 = conv_relu(a1, w2_ref, b2_ref)                      # (C3, HW)
    o_ref[0] = a2.astype(o_ref.dtype)                       # unmasked lane-dense store


def custom_slab_pallas(x_flat, w1_taps, b1, w2_taps, b2, *, k, H, W):
    """Fused conv(k,k)+ReLU -> conv(k,k)+ReLU on (N, C1, H*W). Returns (N, C3, H*W)."""
    N, C1, HW = x_flat.shape
    C2 = w1_taps.shape[1]
    C3 = w2_taps.shape[1]

    kernel = functools.partial(_fused_slab_kernel, k=k, H=H, W=W)

    return pl.pallas_call(
        kernel,
        out_shape=jax.ShapeDtypeStruct((N, C3, HW), x_flat.dtype),
        grid=(N,),
        in_specs=[
            pl.BlockSpec((1, C1, HW), lambda n: (n, 0, 0)),
            pl.BlockSpec((k * k, C2, C1), lambda n: (0, 0, 0)),
            pl.BlockSpec((C2, 1), lambda n: (0, 0)),
            pl.BlockSpec((k * k, C3, C2), lambda n: (0, 0, 0)),
            pl.BlockSpec((C3, 1), lambda n: (0, 0)),
        ],
        out_specs=pl.BlockSpec((1, C3, HW), lambda n: (n, 0, 0)),
        compiler_params=pltpu.CompilerParams(
            dimension_semantics=("parallel",)),   # v7x: batch -> 2 TensorCores
    )(x_flat, w1_taps, b1.reshape(C2, 1), w2_taps, b2.reshape(C3, 1))


class CustomSlabPallas:
    """Two kxk convs (padding=(k-1)//2), each followed by ReLU (NCHW I/O)."""

    def __init__(self, n1, n2, n3, k=5, key=None):
        self.k = k
        self.n1, self.n2, self.n3 = n1, n2, n3
        self.pad = (k - 1) // 2
        key = jax.random.PRNGKey(0) if key is None else key
        k1, k2, k3, k4 = jax.random.split(key, 4)
        bound1 = 1.0 / (n1 * k * k) ** 0.5
        bound2 = 1.0 / (n2 * k * k) ** 0.5
        # HWIO weights (kept for the reference check).
        self.w1 = jax.random.uniform(k1, (k, k, n1, n2), jnp.float32,
                                     -bound1, bound1)
        self.b1 = jax.random.uniform(k2, (n2,), jnp.float32, -bound1, bound1)
        self.w2 = jax.random.uniform(k3, (k, k, n2, n3), jnp.float32,
                                     -bound2, bound2)
        self.b2 = jax.random.uniform(k4, (n3,), jnp.float32, -bound2, bound2)
        # Host pre-packed tap-major weights: (k*k, Cout, Cin).
        self.w1_taps = jnp.transpose(self.w1, (0, 1, 3, 2)).reshape(k * k, n2, n1)
        self.w2_taps = jnp.transpose(self.w2, (0, 1, 3, 2)).reshape(k * k, n3, n2)

    @functools.partial(jax.jit, static_argnums=0)
    def __call__(self, stack_nchw):
        N, C, H, W = stack_nchw.shape
        x_flat = stack_nchw.reshape(N, C, H * W)            # free reshape (stays NCHW-major)
        out_flat = custom_slab_pallas(
            x_flat, self.w1_taps, self.b1, self.w2_taps, self.b2,
            k=self.k, H=H, W=W)                             # (N, n3, H*W)
        return out_flat.reshape(N, self.n3, H, W)           # free reshape, NCHW


if __name__ == "__main__":
    key = jax.random.PRNGKey(0)
    k_in, k_params = jax.random.split(key)

    N, n1, n2, n3, H, W = 2, 4, 8, 4, 16, 16
    x = jax.random.normal(k_in, (N, n1, H, W), jnp.float32)   # NCHW like PyTorch

    model = CustomSlabPallas(n1, n2, n3, k=5, key=k_params)
    out = model(x)
    out = jax.block_until_ready(out)

    # Cross-check against a plain-JAX reference of the same math.
    def ref_conv(xn, w, b, pad):
        y = jax.lax.conv_general_dilated(
            xn, w, window_strides=(1, 1), padding=[(pad, pad), (pad, pad)],
            dimension_numbers=("NHWC", "HWIO", "NHWC"))
        return jnp.maximum(y + b, 0.0)

    xr = jnp.transpose(x, (0, 2, 3, 1))
    xr = ref_conv(xr, model.w1, model.b1, model.pad)
    xr = ref_conv(xr, model.w2, model.b2, model.pad)
    ref = jnp.transpose(xr, (0, 3, 1, 2))

    assert out.shape == (N, n3, H, W), out.shape
    assert jnp.allclose(out, ref, atol=1e-4, rtol=1e-4), "mismatch vs reference"
    print("KERNEL_OK")
</pallas_src>

<mosaic_0001>
module attributes {stable_mosaic.version = 11 : i64} {
  func.func @_fused_slab_kernel(%arg0: i32, %arg1: memref<1x4x256xf32, #tpu.memory_space<vmem>>, %arg2: memref<25x8x4xf32, #tpu.memory_space<vmem>>, %arg3: memref<8x1xf32, #tpu.memory_space<vmem>>, %arg4: memref<25x4x8xf32, #tpu.memory_space<vmem>>, %arg5: memref<4x1xf32, #tpu.memory_space<vmem>>, %arg6: memref<1x4x256xf32, #tpu.memory_space<vmem>>) attributes {dimension_semantics = [#tpu.dimension_semantics<parallel>], iteration_bounds = array<i64: 2>, scalar_prefetch = 0 : i64, scratch_operands = 0 : i64, tpu.core_type = #tpu.core_type<tc>, window_params = [{transform_indices = @transform_0, window_bounds = array<i64: 1, 4, 256>}, {pipeline_mode = #tpu.pipeline_mode<synchronous>, transform_indices = @transform_1, window_bounds = array<i64: 25, 8, 4>}, {pipeline_mode = #tpu.pipeline_mode<synchronous>, transform_indices = @transform_2, window_bounds = array<i64: 8, 1>}, {pipeline_mode = #tpu.pipeline_mode<synchronous>, transform_indices = @transform_3, window_bounds = array<i64: 25, 4, 8>}, {pipeline_mode = #tpu.pipeline_mode<synchronous>, transform_indices = @transform_4, window_bounds = array<i64: 4, 1>}, {transform_indices = @transform_5, window_bounds = array<i64: 1, 4, 256>}]} {
    %0 = tpu.iota {dimensions = array<i32: 1>} : vector<1x256xi32>
    %c4_i32 = arith.constant 4 : i32
    %1 = vector.broadcast %c4_i32 : i32 to vector<1x256xi32>
    %2 = arith.shrsi %0, %1 : vector<1x256xi32>
    %c15_i32 = arith.constant 15 : i32
    %3 = vector.broadcast %c15_i32 : i32 to vector<1x256xi32>
    %4 = arith.andi %0, %3 : vector<1x256xi32>
    %c2_i32 = arith.constant 2 : i32
    %5 = vector.broadcast %c2_i32 : i32 to vector<1x256xi32>
    %6 = arith.cmpi sge, %2, %5 : vector<1x256xi32>
    %c1_i32 = arith.constant 1 : i32
    %7 = vector.broadcast %c1_i32 : i32 to vector<1x256xi32>
    %8 = arith.cmpi sge, %2, %7 : vector<1x256xi32>
    %c15_i32_0 = arith.constant 15 : i32
    %9 = vector.broadcast %c15_i32_0 : i32 to vector<1x256xi32>
    %10 = arith.cmpi slt, %2, %9 : vector<1x256xi32>
    %c14_i32 = arith.constant 14 : i32
    %11 = vector.broadcast %c14_i32 : i32 to vector<1x256xi32>
    %12 = arith.cmpi slt, %2, %11 : vector<1x256xi32>
    %c2_i32_1 = arith.constant 2 : i32
    %13 = vector.broadcast %c2_i32_1 : i32 to vector<1x256xi32>
    %14 = arith.cmpi sge, %4, %13 : vector<1x256xi32>
    %c1_i32_2 = arith.constant 1 : i32
    %15 = vector.broadcast %c1_i32_2 : i32 to vector<1x256xi32>
    %16 = arith.cmpi sge, %4, %15 : vector<1x256xi32>
    %c15_i32_3 = arith.constant 15 : i32
    %17 = vector.broadcast %c15_i32_3 : i32 to vector<1x256xi32>
    %18 = arith.cmpi slt, %4, %17 : vector<1x256xi32>
    %c14_i32_4 = arith.constant 14 : i32
    %19 = vector.broadcast %c14_i32_4 : i32 to vector<1x256xi32>
    %20 = arith.cmpi slt, %4, %19 : vector<1x256xi32>
    %c0 = arith.constant 0 : index
    %c0_5 = arith.constant 0 : index
    %c0_6 = arith.constant 0 : index
    %21 = vector.load %arg1[%c0, %c0_5, %c0_6] : memref<1x4x256xf32, #tpu.memory_space<vmem>>, vector<1x4x256xf32>
    %22 = vector.shape_cast %21 : vector<1x4x256xf32> to vector<4x256xf32>
    %cst = arith.constant 0.000000e+00 : f32
    %23 = vector.broadcast %cst : f32 to vector<8x256xf32>
    %c34_i32 = arith.constant 34 : i32
    %24 = tpu.dynamic_rotate %22 by %c34_i32 dim 1 : vector<4x256xf32>, i32 -> vector<4x256xf32>
    %25 = arith.andi %6, %14 : vector<1x256xi1>
    %cst_7 = arith.constant 0.000000e+00 : f32
    %26 = vector.shape_cast %25 : vector<1x256xi1> to vector<1x256xi1>
    %27 = vector.broadcast %26 : vector<1x256xi1> to vector<4x256xi1>
    %28 = vector.broadcast %cst_7 : f32 to vector<4x256xf32>
    %29 = arith.select %27, %24, %28 : vector<4x256xi1>, vector<4x256xf32>
    %c0_8 = arith.constant 0 : index
    %c0_9 = arith.constant 0 : index
    %c0_10 = arith.constant 0 : index
    %30 = vector.load %arg2[%c0_8, %c0_9, %c0_10] : memref<25x8x4xf32, #tpu.memory_space<vmem>>, vector<1x8x4xf32>
    %31 = vector.shape_cast %30 : vector<1x8x4xf32> to vector<8x4xf32>
    %cst_11 = arith.constant dense<0.000000e+00> : vector<8x256xf32>
    %32 = tpu.matmul %31, %29, %cst_11 {dimension_numbers = #tpu.dot_dimension_numbers<[1], [0], [0], [1], [0, 0, 1, 1], [], []>} : vector<8x4xf32>, vector<4x256xf32>, vector<8x256xf32> -> vector<8x256xf32>
    %33 = arith.addf %23, %32 : vector<8x256xf32>
    %c33_i32 = arith.constant 33 : i32
    %34 = tpu.dynamic_rotate %22 by %c33_i32 dim 1 : vector<4x256xf32>, i32 -> vector<4x256xf32>
    %35 = arith.andi %6, %16 : vector<1x256xi1>
    %cst_12 = arith.constant 0.000000e+00 : f32
    %36 = vector.shape_cast %35 : vector<1x256xi1> to vector<1x256xi1>
    %37 = vector.broadcast %36 : vector<1x256xi1> to vector<4x256xi1>
    %38 = vector.broadcast %cst_12 : f32 to vector<4x256xf32>
    %39 = arith.select %37, %34, %38 : vector<4x256xi1>, vector<4x256xf32>
    %c1 = arith.constant 1 : index
    %c0_13 = arith.constant 0 : index
    %c0_14 = arith.constant 0 : index
    %40 = vector.load %arg2[%c1, %c0_13, %c0_14] : memref<25x8x4xf32, #tpu.memory_space<vmem>>, vector<1x8x4xf32>
    %41 = vector.shape_cast %40 : vector<1x8x4xf32> to vector<8x4xf32>
    %cst_15 = arith.constant dense<0.000000e+00> : vector<8x256xf32>
    %42 = tpu.matmul %41, %39, %cst_15 {dimension_numbers = #tpu.dot_dimension_numbers<[1], [0], [0], [1], [0, 0, 1, 1], [], []>} : vector<8x4xf32>, vector<4x256xf32>, vector<8x256xf32> -> vector<8x256xf32>
    %43 = arith.addf %33, %42 : vector<8x256xf32>
    %c32_i32 = arith.constant 32 : i32
    %44 = tpu.dynamic_rotate %22 by %c32_i32 dim 1 : vector<4x256xf32>, i32 -> vector<4x256xf32>
    %cst_16 = arith.constant 0.000000e+00 : f32
    %45 = vector.shape_cast %6 : vector<1x256xi1> to vector<1x256xi1>
    %46 = vector.broadcast %45 : vector<1x256xi1> to vector<4x256xi1>
    %47 = vector.broadcast %cst_16 : f32 to vector<4x256xf32>
    %48 = arith.select %46, %44, %47 : vector<4x256xi1>, vector<4x256xf32>
    %c2 = arith.constant 2 : index
    %c0_17 = arith.constant 0 : index
    %c0_18 = arith.constant 0 : index
    %49 = vector.load %arg2[%c2, %c0_17, %c0_18] : memref<25x8x4xf32, #tpu.memory_space<vmem>>, vector<1x8x4xf32>
    %50 = vector.shape_cast %49 : vector<1x8x4xf32> to vector<8x4xf32>
    %cst_19 = arith.constant dense<0.000000e+00> : vector<8x256xf32>
    %51 = tpu.matmul %50, %48, %cst_19 {dimension_numbers = #tpu.dot_dimension_numbers<[1], [0], [0], [1], [0, 0, 1, 1], [], []>} : vector<8x4xf32>, vector<4x256xf32>, vector<8x256xf32> -> vector<8x256xf32>
    %52 = arith.addf %43, %51 : vector<8x256xf32>
    %c31_i32 = arith.constant 31 : i32
    %53 = tpu.dynamic_rotate %22 by %c31_i32 dim 1 : vector<4x256xf32>, i32 -> vector<4x256xf32>
    %54 = arith.andi %6, %18 : vector<1x256xi1>
    %cst_20 = arith.constant 0.000000e+00 : f32
    %55 = vector.shape_cast %54 : vector<1x256xi1> to vector<1x256xi1>
    %56 = vector.broadcast %55 : vector<1x256xi1> to vector<4x256xi1>
    %57 = vector.broadcast %cst_20 : f32 to vector<4x256xf32>
    %58 = arith.select %56, %53, %57 : vector<4x256xi1>, vector<4x256xf32>
    %c3 = arith.constant 3 : index
    %c0_21 = arith.constant 0 : index
    %c0_22 = arith.constant 0 : index
    %59 = vector.load %arg2[%c3, %c0_21, %c0_22] : memref<25x8x4xf32, #tpu.memory_space<vmem>>, vector<1x8x4xf32>
    %60 = vector.shape_cast %59 : vector<1x8x4xf32> to vector<8x4xf32>
    %cst_23 = arith.constant dense<0.000000e+00> : vector<8x256xf32>
    %61 = tpu.matmul %60, %58, %cst_23 {dimension_numbers = #tpu.dot_dimension_numbers<[1], [0], [0], [1], [0, 0, 1, 1], [], []>} : vector<8x4xf32>, vector<4x256xf32>, vector<8x256xf32> -> vector<8x256xf32>
    %62 = arith.addf %52, %61 : vector<8x256xf32>
    %c30_i32 = arith.constant 30 : i32
    %63 = tpu.dynamic_rotate %22 by %c30_i32 dim 1 : vector<4x256xf32>, i32 -> vector<4x256xf32>
    %64 = arith.andi %6, %20 : vector<1x256xi1>
    %cst_24 = arith.constant 0.000000e+00 : f32
    %65 = vector.shape_cast %64 : vector<1x256xi1> to vector<1x256xi1>
    %66 = vector.broadcast %65 : vector<1x256xi1> to vector<4x256xi1>
    %67 = vector.broadcast %cst_24 : f32 to vector<4x256xf32>
    %68 = arith.select %66, %63, %67 : vector<4x256xi1>, vector<4x256xf32>
    %c4 = arith.constant 4 : index
    %c0_25 = arith.constant 0 : index
    %c0_26 = arith.constant 0 : index
    %69 = vector.load %arg2[%c4, %c0_25, %c0_26] : memref<25x8x4xf32, #tpu.memory_space<vmem>>, vector<1x8x4xf32>
    %70 = vector.shape_cast %69 : vector<1x8x4xf32> to vector<8x4xf32>
    %cst_27 = arith.constant dense<0.000000e+00> : vector<8x256xf32>
    %71 = tpu.matmul %70, %68, %cst_27 {dimension_numbers = #tpu.dot_dimension_numbers<[1], [0], [0], [1], [0, 0, 1, 1], [], []>} : vector<8x4xf32>, vector<4x256xf32>, vector<8x256xf32> -> vector<8x256xf32>
    %72 = arith.addf %62, %71 : vector<8x256xf32>
    %c18_i32 = arith.constant 18 : i32
    %73 = tpu.dynamic_rotate %22 by %c18_i32 dim 1 : vector<4x256xf32>, i32 -> vector<4x256xf32>
    %74 = arith.andi %8, %14 : vector<1x256xi1>
    %cst_28 = arith.constant 0.000000e+00 : f32
    %75 = vector.shape_cast %74 : vector<1x256xi1> to vector<1x256xi1>
    %76 = vector.broadcast %75 : vector<1x256xi1> to vector<4x256xi1>
    %77 = vector.broadcast %cst_28 : f32 to vector<4x256xf32>
    %78 = arith.select %76, %73, %77 : vector<4x256xi1>, vector<4x256xf32>
    %c5 = arith.constant 5 : index
    %c0_29 = arith.constant 0 : index
    %c0_30 = arith.constant 0 : index
    %79 = vector.load %arg2[%c5, %c0_29, %c0_30] : memref<25x8x4xf32, #tpu.memory_space<vmem>>, vector<1x8x4xf32>
    %80 = vector.shape_cast %79 : vector<1x8x4xf32> to vector<8x4xf32>
    %cst_31 = arith.constant dense<0.000000e+00> : vector<8x256xf32>
    %81 = tpu.matmul %80, %78, %cst_31 {dimension_numbers = #tpu.dot_dimension_numbers<[1], [0], [0], [1], [0, 0, 1, 1], [], []>} : vector<8x4xf32>, vector<4x256xf32>, vector<8x256xf32> -> vector<8x256xf32>
    %82 = arith.addf %72, %81 : vector<8x256xf32>
    %c17_i32 = arith.constant 17 : i32
    %83 = tpu.dynamic_rotate %22 by %c17_i32 dim 1 : vector<4x256xf32>, i32 -> vector<4x256xf32>
    %84 = arith.andi %8, %16 : vector<1x256xi1>
    %cst_32 = arith.constant 0.000000e+00 : f32
    %85 = vector.shape_cast %84 : vector<1x256xi1> to vector<1x256xi1>
    %86 = vector.broadcast %85 : vector<1x256xi1> to vector<4x256xi1>
    %87 = vector.broadcast %cst_32 : f32 to vector<4x256xf32>
    %88 = arith.select %86, %83, %87 : vector<4x256xi1>, vector<4x256xf32>
    %c6 = arith.constant 6 : index
    %c0_33 = arith.constant 0 : index
    %c0_34 = arith.constant 0 : index
    %89 = vector.load %arg2[%c6, %c0_33, %c0_34] : memref<25x8x4xf32, #tpu.memory_space<vmem>>, vector<1x8x4xf32>
    %90 = vector.shape_cast %89 : vector<1x8x4xf32> to vector<8x4xf32>
    %cst_35 = arith.constant dense<0.000000e+00> : vector<8x256xf32>
    %91 = tpu.matmul %90, %88, %cst_35 {dimension_numbers = #tpu.dot_dimension_numbers<[1], [0], [0], [1], [0, 0, 1, 1], [], []>} : vector<8x4xf32>, vector<4x256xf32>, vector<8x256xf32> -> vector<8x256xf32>
    %92 = arith.addf %82, %91 : vector<8x256xf32>
    %c16_i32 = arith.constant 16 : i32
    %93 = tpu.dynamic_rotate %22 by %c16_i32 dim 1 : vector<4x256xf32>, i32 -> vector<4x256xf32>
    %cst_36 = arith.constant 0.000000e+00 : f32
    %94 = vector.shape_cast %8 : vector<1x256xi1> to vector<1x256xi1>
    %95 = vector.broadcast %94 : vector<1x256xi1> to vector<4x256xi1>
    %96 = vector.broadcast %cst_36 : f32 to vector<4x256xf32>
    %97 = arith.select %95, %93, %96 : vector<4x256xi1>, vector<4x256xf32>
    %c7 = arith.constant 7 : index
    %c0_37 = arith.constant 0 : index
    %c0_38 = arith.constant 0 : index
    %98 = vector.load %arg2[%c7, %c0_37, %c0_38] : memref<25x8x4xf32, #tpu.memory_space<vmem>>, vector<1x8x4xf32>
    %99 = vector.shape_cast %98 : vector<1x8x4xf32> to vector<8x4xf32>
    %cst_39 = arith.constant dense<0.000000e+00> : vector<8x256xf32>
    %100 = tpu.matmul %99, %97, %cst_39 {dimension_numbers = #tpu.dot_dimension_numbers<[1], [0], [0], [1], [0, 0, 1, 1], [], []>} : vector<8x4xf32>, vector<4x256xf32>, vector<8x256xf32> -> vector<8x256xf32>
    %101 = arith.addf %92, %100 : vector<8x256xf32>
    %c15_i32_40 = arith.constant 15 : i32
    %102 = tpu.dynamic_rotate %22 by %c15_i32_40 dim 1 : vector<4x256xf32>, i32 -> vector<4x256xf32>
    %103 = arith.andi %8, %18 : vector<1x256xi1>
    %cst_41 = arith.constant 0.000000e+00 : f32
    %104 = vector.shape_cast %103 : vector<1x256xi1> to vector<1x256xi1>
    %105 = vector.broadcast %104 : vector<1x256xi1> to vector<4x256xi1>
    %106 = vector.broadcast %cst_41 : f32 to vector<4x256xf32>
    %107 = arith.select %105, %102, %106 : vector<4x256xi1>, vector<4x256xf32>
    %c8 = arith.constant 8 : index
    %c0_42 = arith.constant 0 : index
    %c0_43 = arith.constant 0 : index
    %108 = vector.load %arg2[%c8, %c0_42, %c0_43] : memref<25x8x4xf32, #tpu.memory_space<vmem>>, vector<1x8x4xf32>
    %109 = vector.shape_cast %108 : vector<1x8x4xf32> to vector<8x4xf32>
    %cst_44 = arith.constant dense<0.000000e+00> : vector<8x256xf32>
    %110 = tpu.matmul %109, %107, %cst_44 {dimension_numbers = #tpu.dot_dimension_numbers<[1], [0], [0], [1], [0, 0, 1, 1], [], []>} : vector<8x4xf32>, vector<4x256xf32>, vector<8x256xf32> -> vector<8x256xf32>
    %111 = arith.addf %101, %110 : vector<8x256xf32>
    %c14_i32_45 = arith.constant 14 : i32
    %112 = tpu.dynamic_rotate %22 by %c14_i32_45 dim 1 : vector<4x256xf32>, i32 -> vector<4x256xf32>
    %113 = arith.andi %8, %20 : vector<1x256xi1>
    %cst_46 = arith.constant 0.000000e+00 : f32
    %114 = vector.shape_cast %113 : vector<1x256xi1> to vector<1x256xi1>
    %115 = vector.broadcast %114 : vector<1x256xi1> to vector<4x256xi1>
    %116 = vector.broadcast %cst_46 : f32 to vector<4x256xf32>
    %117 = arith.select %115, %112, %116 : vector<4x256xi1>, vector<4x256xf32>
    %c9 = arith.constant 9 : index
    %c0_47 = arith.constant 0 : index
    %c0_48 = arith.constant 0 : index
    %118 = vector.load %arg2[%c9, %c0_47, %c0_48] : memref<25x8x4xf32, #tpu.memory_space<vmem>>, vector<1x8x4xf32>
    %119 = vector.shape_cast %118 : vector<1x8x4xf32> to vector<8x4xf32>
    %cst_49 = arith.constant dense<0.000000e+00> : vector<8x256xf32>
    %120 = tpu.matmul %119, %117, %cst_49 {dimension_numbers = #tpu.dot_dimension_numbers<[1], [0], [0], [1], [0, 0, 1, 1], [], []>} : vector<8x4xf32>, vector<4x256xf32>, vector<8x256xf32> -> vector<8x256xf32>
    %121 = arith.addf %111, %120 : vector<8x256xf32>
    %c2_i32_50 = arith.constant 2 : i32
    %122 = tpu.dynamic_rotate %22 by %c2_i32_50 dim 1 : vector<4x256xf32>, i32 -> vector<4x256xf32>
    %cst_51 = arith.constant 0.000000e+00 : f32
    %123 = vector.shape_cast %14 : vector<1x256xi1> to vector<1x256xi1>
    %124 = vector.broadcast %123 : vector<1x256xi1> to vector<4x256xi1>
    %125 = vector.broadcast %cst_51 : f32 to vector<4x256xf32>
    %126 = arith.select %124, %122, %125 : vector<4x256xi1>, vector<4x256xf32>
    %c10 = arith.constant 10 : index
    %c0_52 = arith.constant 0 : index
    %c0_53 = arith.constant 0 : index
    %127 = vector.load %arg2[%c10, %c0_52, %c0_53] : memref<25x8x4xf32, #tpu.memory_space<vmem>>, vector<1x8x4xf32>
    %128 = vector.shape_cast %127 : vector<1x8x4xf32> to vector<8x4xf32>
    %cst_54 = arith.constant dense<0.000000e+00> : vector<8x256xf32>
    %129 = tpu.matmul %128, %126, %cst_54 {dimension_numbers = #tpu.dot_dimension_numbers<[1], [0], [0], [1], [0, 0, 1, 1], [], []>} : vector<8x4xf32>, vector<4x256xf32>, vector<8x256xf32> -> vector<8x256xf32>
    %130 = arith.addf %121, %129 : vector<8x256xf32>
    %c1_i32_55 = arith.constant 1 : i32
    %131 = tpu.dynamic_rotate %22 by %c1_i32_55 dim 1 : vector<4x256xf32>, i32 -> vector<4x256xf32>
    %cst_56 = arith.constant 0.000000e+00 : f32
    %132 = vector.shape_cast %16 : vector<1x256xi1> to vector<1x256xi1>
    %133 = vector.broadcast %132 : vector<1x256xi1> to vector<4x256xi1>
    %134 = vector.broadcast %cst_56 : f32 to vector<4x256xf32>
    %135 = arith.select %133, %131, %134 : vector<4x256xi1>, vector<4x256xf32>
    %c11 = arith.constant 11 : index
    %c0_57 = arith.constant 0 : index
    %c0_58 = arith.constant 0 : index
    %136 = vector.load %arg2[%c11, %c0_57, %c0_58] : memref<25x8x4xf32, #tpu.memory_space<vmem>>, vector<1x8x4xf32>
    %137 = vector.shape_cast %136 : vector<1x8x4xf32> to vector<8x4xf32>
    %cst_59 = arith.constant dense<0.000000e+00> : vector<8x256xf32>
    %138 = tpu.matmul %137, %135, %cst_59 {dimension_numbers = #tpu.dot_dimension_numbers<[1], [0], [0], [1], [0, 0, 1, 1], [], []>} : vector<8x4xf32>, vector<4x256xf32>, vector<8x256xf32> -> vector<8x256xf32>
    %139 = arith.addf %130, %138 : vector<8x256xf32>
    %c12 = arith.constant 12 : index
    %c0_60 = arith.constant 0 : index
    %c0_61 = arith.constant 0 : index
    %140 = vector.load %arg2[%c12, %c0_60, %c0_61] : memref<25x8x4xf32, #tpu.memory_space<vmem>>, vector<1x8x4xf32>
    %141 = vector.shape_cast %140 : vector<1x8x4xf32> to vector<8x4xf32>
    %cst_62 = arith.constant dense<0.000000e+00> : vector<8x256xf32>
    %142 = tpu.matmul %141, %22, %cst_62 {dimension_numbers = #tpu.dot_dimension_numbers<[1], [0], [0], [1], [0, 0, 1, 1], [], []>} : vector<8x4xf32>, vector<4x256xf32>, vector<8x256xf32> -> vector<8x256xf32>
    %143 = arith.addf %139, %142 : vector<8x256xf32>
    %c255_i32 = arith.constant 255 : i32
    %144 = tpu.dynamic_rotate %22 by %c255_i32 dim 1 : vector<4x256xf32>, i32 -> vector<4x256xf32>
    %cst_63 = arith.constant 0.000000e+00 : f32
    %145 = vector.shape_cast %18 : vector<1x256xi1> to vector<1x256xi1>
    %146 = vector.broadcast %145 : vector<1x256xi1> to vector<4x256xi1>
    %147 = vector.broadcast %cst_63 : f32 to vector<4x256xf32>
    %148 = arith.select %146, %144, %147 : vector<4x256xi1>, vector<4x256xf32>
    %c13 = arith.constant 13 : index
    %c0_64 = arith.constant 0 : index
    %c0_65 = arith.constant 0 : index
    %149 = vector.load %arg2[%c13, %c0_64, %c0_65] : memref<25x8x4xf32, #tpu.memory_space<vmem>>, vector<1x8x4xf32>
    %150 = vector.shape_cast %149 : vector<1x8x4xf32> to vector<8x4xf32>
    %cst_66 = arith.constant dense<0.000000e+00> : vector<8x256xf32>
    %151 = tpu.matmul %150, %148, %cst_66 {dimension_numbers = #tpu.dot_dimension_numbers<[1], [0], [0], [1], [0, 0, 1, 1], [], []>} : vector<8x4xf32>, vector<4x256xf32>, vector<8x256xf32> -> vector<8x256xf32>
    %152 = arith.addf %143, %151 : vector<8x256xf32>
    %c254_i32 = arith.constant 254 : i32
    %153 = tpu.dynamic_rotate %22 by %c254_i32 dim 1 : vector<4x256xf32>, i32 -> vector<4x256xf32>
    %cst_67 = arith.constant 0.000000e+00 : f32
    %154 = vector.shape_cast %20 : vector<1x256xi1> to vector<1x256xi1>
    %155 = vector.broadcast %154 : vector<1x256xi1> to vector<4x256xi1>
    %156 = vector.broadcast %cst_67 : f32 to vector<4x256xf32>
    %157 = arith.select %155, %153, %156 : vector<4x256xi1>, vector<4x256xf32>
    %c14 = arith.constant 14 : index
    %c0_68 = arith.constant 0 : index
    %c0_69 = arith.constant 0 : index
    %158 = vector.load %arg2[%c14, %c0_68, %c0_69] : memref<25x8x4xf32, #tpu.memory_space<vmem>>, vector<1x8x4xf32>
    %159 = vector.shape_cast %158 : vector<1x8x4xf32> to vector<8x4xf32>
    %cst_70 = arith.constant dense<0.000000e+00> : vector<8x256xf32>
    %160 = tpu.matmul %159, %157, %cst_70 {dimension_numbers = #tpu.dot_dimension_numbers<[1], [0], [0], [1], [0, 0, 1, 1], [], []>} : vector<8x4xf32>, vector<4x256xf32>, vector<8x256xf32> -> vector<8x256xf32>
    %161 = arith.addf %152, %160 : vector<8x256xf32>
    %c242_i32 = arith.constant 242 : i32
    %162 = tpu.dynamic_rotate %22 by %c242_i32 dim 1 : vector<4x256xf32>, i32 -> vector<4x256xf32>
    %163 = arith.andi %10, %14 : vector<1x256xi1>
    %cst_71 = arith.constant 0.000000e+00 : f32
    %164 = vector.shape_cast %163 : vector<1x256xi1> to vector<1x256xi1>
    %165 = vector.broadcast %164 : vector<1x256xi1> to vector<4x256xi1>
    %166 = vector.broadcast %cst_71 : f32 to vector<4x256xf32>
    %167 = arith.select %165, %162, %166 : vector<4x256xi1>, vector<4x256xf32>
    %c15 = arith.constant 15 : index
    %c0_72 = arith.constant 0 : index
    %c0_73 = arith.constant 0 : index
    %168 = vector.load %arg2[%c15, %c0_72, %c0_73] : memref<25x8x4xf32, #tpu.memory_space<vmem>>, vector<1x8x4xf32>
    %169 = vector.shape_cast %168 : vector<1x8x4xf32> to vector<8x4xf32>
    %cst_74 = arith.constant dense<0.000000e+00> : vector<8x256xf32>
    %170 = tpu.matmul %169, %167, %cst_74 {dimension_numbers = #tpu.dot_dimension_numbers<[1], [0], [0], [1], [0, 0, 1, 1], [], []>} : vector<8x4xf32>, vector<4x256xf32>, vector<8x256xf32> -> vector<8x256xf32>
    %171 = arith.addf %161, %170 : vector<8x256xf32>
    %c241_i32 = arith.constant 241 : i32
    %172 = tpu.dynamic_rotate %22 by %c241_i32 dim 1 : vector<4x256xf32>, i32 -> vector<4x256xf32>
    %173 = arith.andi %10, %16 : vector<1x256xi1>
    %cst_75 = arith.constant 0.000000e+00 : f32
    %174 = vector.shape_cast %173 : vector<1x256xi1> to vector<1x256xi1>
    %175 = vector.broadcast %174 : vector<1x256xi1> to vector<4x256xi1>
    %176 = vector.broadcast %cst_75 : f32 to vector<4x256xf32>
    %177 = arith.select %175, %172, %176 : vector<4x256xi1>, vector<4x256xf32>
    %c16 = arith.constant 16 : index
    %c0_76 = arith.constant 0 : index
    %c0_77 = arith.constant 0 : index
    %178 = vector.load %arg2[%c16, %c0_76, %c0_77] : memref<25x8x4xf32, #tpu.memory_space<vmem>>, vector<1x8x4xf32>
    %179 = vector.shape_cast %178 : vector<1x8x4xf32> to vector<8x4xf32>
    %cst_78 = arith.constant dense<0.000000e+00> : vector<8x256xf32>
    %180 = tpu.matmul %179, %177, %cst_78 {dimension_numbers = #tpu.dot_dimension_numbers<[1], [0], [0], [1], [0, 0, 1, 1], [], []>} : vector<8x4xf32>, vector<4x256xf32>, vector<8x256xf32> -> vector<8x256xf32>
    %181 = arith.addf %171, %180 : vector<8x256xf32>
    %c240_i32 = arith.constant 240 : i32
    %182 = tpu.dynamic_rotate %22 by %c240_i32 dim 1 : vector<4x256xf32>, i32 -> vector<4x256xf32>
    %cst_79 = arith.constant 0.000000e+00 : f32
    %183 = vector.shape_cast %10 : vector<1x256xi1> to vector<1x256xi1>
    %184 = vector.broadcast %183 : vector<1x256xi1> to vector<4x256xi1>
    %185 = vector.broadcast %cst_79 : f32 to vector<4x256xf32>
    %186 = arith.select %184, %182, %185 : vector<4x256xi1>, vector<4x256xf32>
    %c17 = arith.constant 17 : index
    %c0_80 = arith.constant 0 : index
    %c0_81 = arith.constant 0 : index
    %187 = vector.load %arg2[%c17, %c0_80, %c0_81] : memref<25x8x4xf32, #tpu.memory_space<vmem>>, vector<1x8x4xf32>
    %188 = vector.shape_cast %187 : vector<1x8x4xf32> to vector<8x4xf32>
    %cst_82 = arith.constant dense<0.000000e+00> : vector<8x256xf32>
    %189 = tpu.matmul %188, %186, %cst_82 {dimension_numbers = #tpu.dot_dimension_numbers<[1], [0], [0], [1], [0, 0, 1, 1], [], []>} : vector<8x4xf32>, vector<4x256xf32>, vector<8x256xf32> -> vector<8x256xf32>
    %190 = arith.addf %181, %189 : vector<8x256xf32>
    %c239_i32 = arith.constant 239 : i32
    %191 = tpu.dynamic_rotate %22 by %c239_i32 dim 1 : vector<4x256xf32>, i32 -> vector<4x256xf32>
    %192 = arith.andi %10, %18 : vector<1x256xi1>
    %cst_83 = arith.constant 0.000000e+00 : f32
    %193 = vector.shape_cast %192 : vector<1x256xi1> to vector<1x256xi1>
    %194 = vector.broadcast %193 : vector<1x256xi1> to vector<4x256xi1>
    %195 = vector.broadcast %cst_83 : f32 to vector<4x256xf32>
    %196 = arith.select %194, %191, %195 : vector<4x256xi1>, vector<4x256xf32>
    %c18 = arith.constant 18 : index
    %c0_84 = arith.constant 0 : index
    %c0_85 = arith.constant 0 : index
    %197 = vector.load %arg2[%c18, %c0_84, %c0_85] : memref<25x8x4xf32, #tpu.memory_space<vmem>>, vector<1x8x4xf32>
    %198 = vector.shape_cast %197 : vector<1x8x4xf32> to vector<8x4xf32>
    %cst_86 = arith.constant dense<0.000000e+00> : vector<8x256xf32>
    %199 = tpu.matmul %198, %196, %cst_86 {dimension_numbers = #tpu.dot_dimension_numbers<[1], [0], [0], [1], [0, 0, 1, 1], [], []>} : vector<8x4xf32>, vector<4x256xf32>, vector<8x256xf32> -> vector<8x256xf32>
    %200 = arith.addf %190, %199 : vector<8x256xf32>
    %c238_i32 = arith.constant 238 : i32
    %201 = tpu.dynamic_rotate %22 by %c238_i32 dim 1 : vector<4x256xf32>, i32 -> vector<4x256xf32>
    %202 = arith.andi %10, %20 : vector<1x256xi1>
    %cst_87 = arith.constant 0.000000e+00 : f32
    %203 = vector.shape_cast %202 : vector<1x256xi1> to vector<1x256xi1>
    %204 = vector.broadcast %203 : vector<1x256xi1> to vector<4x256xi1>
    %205 = vector.broadcast %cst_87 : f32 to vector<4x256xf32>
    %206 = arith.select %204, %201, %205 : vector<4x256xi1>, vector<4x256xf32>
    %c19 = arith.constant 19 : index
    %c0_88 = arith.constant 0 : index
    %c0_89 = arith.constant 0 : index
    %207 = vector.load %arg2[%c19, %c0_88, %c0_89] : memref<25x8x4xf32, #tpu.memory_space<vmem>>, vector<1x8x4xf32>
    %208 = vector.shape_cast %207 : vector<1x8x4xf32> to vector<8x4xf32>
    %cst_90 = arith.constant dense<0.000000e+00> : vector<8x256xf32>
    %209 = tpu.matmul %208, %206, %cst_90 {dimension_numbers = #tpu.dot_dimension_numbers<[1], [0], [0], [1], [0, 0, 1, 1], [], []>} : vector<8x4xf32>, vector<4x256xf32>, vector<8x256xf32> -> vector<8x256xf32>
    %210 = arith.addf %200, %209 : vector<8x256xf32>
    %c226_i32 = arith.constant 226 : i32
    %211 = tpu.dynamic_rotate %22 by %c226_i32 dim 1 : vector<4x256xf32>, i32 -> vector<4x256xf32>
    %212 = arith.andi %12, %14 : vector<1x256xi1>
    %cst_91 = arith.constant 0.000000e+00 : f32
    %213 = vector.shape_cast %212 : vector<1x256xi1> to vector<1x256xi1>
    %214 = vector.broadcast %213 : vector<1x256xi1> to vector<4x256xi1>
    %215 = vector.broadcast %cst_91 : f32 to vector<4x256xf32>
    %216 = arith.select %214, %211, %215 : vector<4x256xi1>, vector<4x256xf32>
    %c20 = arith.constant 20 : index
    %c0_92 = arith.constant 0 : index
    %c0_93 = arith.constant 0 : index
    %217 = vector.load %arg2[%c20, %c0_92, %c0_93] : memref<25x8x4xf32, #tpu.memory_space<vmem>>, vector<1x8x4xf32>
    %218 = vector.shape_cast %217 : vector<1x8x4xf32> to vector<8x4xf32>
    %cst_94 = arith.constant dense<0.000000e+00> : vector<8x256xf32>
    %219 = tpu.matmul %218, %216, %cst_94 {dimension_numbers = #tpu.dot_dimension_numbers<[1], [0], [0], [1], [0, 0, 1, 1], [], []>} : vector<8x4xf32>, vector<4x256xf32>, vector<8x256xf32> -> vector<8x256xf32>
    %220 = arith.addf %210, %219 : vector<8x256xf32>
    %c225_i32 = arith.constant 225 : i32
    %221 = tpu.dynamic_rotate %22 by %c225_i32 dim 1 : vector<4x256xf32>, i32 -> vector<4x256xf32>
    %222 = arith.andi %12, %16 : vector<1x256xi1>
    %cst_95 = arith.constant 0.000000e+00 : f32
    %223 = vector.shape_cast %222 : vector<1x256xi1> to vector<1x256xi1>
    %224 = vector.broadcast %223 : vector<1x256xi1> to vector<4x256xi1>
    %225 = vector.broadcast %cst_95 : f32 to vector<4x256xf32>
    %226 = arith.select %224, %221, %225 : vector<4x256xi1>, vector<4x256xf32>
    %c21 = arith.constant 21 : index
    %c0_96 = arith.constant 0 : index
    %c0_97 = arith.constant 0 : index
    %227 = vector.load %arg2[%c21, %c0_96, %c0_97] : memref<25x8x4xf32, #tpu.memory_space<vmem>>, vector<1x8x4xf32>
    %228 = vector.shape_cast %227 : vector<1x8x4xf32> to vector<8x4xf32>
    %cst_98 = arith.constant dense<0.000000e+00> : vector<8x256xf32>
    %229 = tpu.matmul %228, %226, %cst_98 {dimension_numbers = #tpu.dot_dimension_numbers<[1], [0], [0], [1], [0, 0, 1, 1], [], []>} : vector<8x4xf32>, vector<4x256xf32>, vector<8x256xf32> -> vector<8x256xf32>
    %230 = arith.addf %220, %229 : vector<8x256xf32>
    %c224_i32 = arith.constant 224 : i32
    %231 = tpu.dynamic_rotate %22 by %c224_i32 dim 1 : vector<4x256xf32>, i32 -> vector<4x256xf32>
    %cst_99 = arith.constant 0.000000e+00 : f32
    %232 = vector.shape_cast %12 : vector<1x256xi1> to vector<1x256xi1>
    %233 = vector.broadcast %232 : vector<1x256xi1> to vector<4x256xi1>
    %234 = vector.broadcast %cst_99 : f32 to vector<4x256xf32>
    %235 = arith.select %233, %231, %234 : vector<4x256xi1>, vector<4x256xf32>
    %c22 = arith.constant 22 : index
    %c0_100 = arith.constant 0 : index
    %c0_101 = arith.constant 0 : index
    %236 = vector.load %arg2[%c22, %c0_100, %c0_101] : memref<25x8x4xf32, #tpu.memory_space<vmem>>, vector<1x8x4xf32>
    %237 = vector.shape_cast %236 : vector<1x8x4xf32> to vector<8x4xf32>
    %cst_102 = arith.constant dense<0.000000e+00> : vector<8x256xf32>
    %238 = tpu.matmul %237, %235, %cst_102 {dimension_numbers = #tpu.dot_dimension_numbers<[1], [0], [0], [1], [0, 0, 1, 1], [], []>} : vector<8x4xf32>, vector<4x256xf32>, vector<8x256xf32> -> vector<8x256xf32>
    %239 = arith.addf %230, %238 : vector<8x256xf32>
    %c223_i32 = arith.constant 223 : i32
    %240 = tpu.dynamic_rotate %22 by %c223_i32 dim 1 : vector<4x256xf32>, i32 -> vector<4x256xf32>
    %241 = arith.andi %12, %18 : vector<1x256xi1>
    %cst_103 = arith.constant 0.000000e+00 : f32
    %242 = vector.shape_cast %241 : vector<1x256xi1> to vector<1x256xi1>
    %243 = vector.broadcast %242 : vector<1x256xi1> to vector<4x256xi1>
    %244 = vector.broadcast %cst_103 : f32 to vector<4x256xf32>
    %245 = arith.select %243, %240, %244 : vector<4x256xi1>, vector<4x256xf32>
    %c23 = arith.constant 23 : index
    %c0_104 = arith.constant 0 : index
    %c0_105 = arith.constant 0 : index
    %246 = vector.load %arg2[%c23, %c0_104, %c0_105] : memref<25x8x4xf32, #tpu.memory_space<vmem>>, vector<1x8x4xf32>
    %247 = vector.shape_cast %246 : vector<1x8x4xf32> to vector<8x4xf32>
    %cst_106 = arith.constant dense<0.000000e+00> : vector<8x256xf32>
    %248 = tpu.matmul %247, %245, %cst_106 {dimension_numbers = #tpu.dot_dimension_numbers<[1], [0], [0], [1], [0, 0, 1, 1], [], []>} : vector<8x4xf32>, vector<4x256xf32>, vector<8x256xf32> -> vector<8x256xf32>
    %249 = arith.addf %239, %248 : vector<8x256xf32>
    %c222_i32 = arith.constant 222 : i32
    %250 = tpu.dynamic_rotate %22 by %c222_i32 dim 1 : vector<4x256xf32>, i32 -> vector<4x256xf32>
    %251 = arith.andi %12, %20 : vector<1x256xi1>
    %cst_107 = arith.constant 0.000000e+00 : f32
    %252 = vector.shape_cast %251 : vector<1x256xi1> to vector<1x256xi1>
    %253 = vector.broadcast %252 : vector<1x256xi1> to vector<4x256xi1>
    %254 = vector.broadcast %cst_107 : f32 to vector<4x256xf32>
    %255 = arith.select %253, %250, %254 : vector<4x256xi1>, vector<4x256xf32>
    %c24 = arith.constant 24 : index
    %c0_108 = arith.constant 0 : index
    %c0_109 = arith.constant 0 : index
    %256 = vector.load %arg2[%c24, %c0_108, %c0_109] : memref<25x8x4xf32, #tpu.memory_space<vmem>>, vector<1x8x4xf32>
    %257 = vector.shape_cast %256 : vector<1x8x4xf32> to vector<8x4xf32>
    %cst_110 = arith.constant dense<0.000000e+00> : vector<8x256xf32>
    %258 = tpu.matmul %257, %255, %cst_110 {dimension_numbers = #tpu.dot_dimension_numbers<[1], [0], [0], [1], [0, 0, 1, 1], [], []>} : vector<8x4xf32>, vector<4x256xf32>, vector<8x256xf32> -> vector<8x256xf32>
    %259 = arith.addf %249, %258 : vector<8x256xf32>
    %c0_111 = arith.constant 0 : index
    %c0_112 = arith.constant 0 : index
    %260 = vector.load %arg3[%c0_111, %c0_112] : memref<8x1xf32, #tpu.memory_space<vmem>>, vector<8x1xf32>
    %261 = vector.broadcast %260 : vector<8x1xf32> to vector<8x256xf32>
    %262 = arith.addf %259, %261 : vector<8x256xf32>
    %cst_113 = arith.constant 0.000000e+00 : f32
    %263 = vector.broadcast %cst_113 : f32 to vector<8x256xf32>
    %264 = arith.maximumf %262, %263 : vector<8x256xf32>
    %cst_114 = arith.constant 0.000000e+00 : f32
    %265 = vector.broadcast %cst_114 : f32 to vector<4x256xf32>
    %c34_i32_115 = arith.constant 34 : i32
    %266 = tpu.dynamic_rotate %264 by %c34_i32_115 dim 1 : vector<8x256xf32>, i32 -> vector<8x256xf32>
    %267 = arith.andi %6, %14 : vector<1x256xi1>
    %cst_116 = arith.constant 0.000000e+00 : f32
    %268 = vector.shape_cast %267 : vector<1x256xi1> to vector<1x256xi1>
    %269 = vector.broadcast %268 : vector<1x256xi1> to vector<8x256xi1>
    %270 = vector.broadcast %cst_116 : f32 to vector<8x256xf32>
    %271 = arith.select %269, %266, %270 : vector<8x256xi1>, vector<8x256xf32>
    %c0_117 = arith.constant 0 : index
    %c0_118 = arith.constant 0 : index
    %c0_119 = arith.constant 0 : index
    %272 = vector.load %arg4[%c0_117, %c0_118, %c0_119] : memref<25x4x8xf32, #tpu.memory_space<vmem>>, vector<1x4x8xf32>
    %273 = vector.shape_cast %272 : vector<1x4x8xf32> to vector<4x8xf32>
    %cst_120 = arith.constant dense<0.000000e+00> : vector<4x256xf32>
    %274 = tpu.matmul %273, %271, %cst_120 {dimension_numbers = #tpu.dot_dimension_numbers<[1], [0], [0], [1], [0, 0, 1, 1], [], []>} : vector<4x8xf32>, vector<8x256xf32>, vector<4x256xf32> -> vector<4x256xf32>
    %275 = arith.addf %265, %274 : vector<4x256xf32>
    %c33_i32_121 = arith.constant 33 : i32
    %276 = tpu.dynamic_rotate %264 by %c33_i32_121 dim 1 : vector<8x256xf32>, i32 -> vector<8x256xf32>
    %277 = arith.andi %6, %16 : vector<1x256xi1>
    %cst_122 = arith.constant 0.000000e+00 : f32
    %278 = vector.shape_cast %277 : vector<1x256xi1> to vector<1x256xi1>
    %279 = vector.broadcast %278 : vector<1x256xi1> to vector<8x256xi1>
    %280 = vector.broadcast %cst_122 : f32 to vector<8x256xf32>
    %281 = arith.select %279, %276, %280 : vector<8x256xi1>, vector<8x256xf32>
    %c1_123 = arith.constant 1 : index
    %c0_124 = arith.constant 0 : index
    %c0_125 = arith.constant 0 : index
    %282 = vector.load %arg4[%c1_123, %c0_124, %c0_125] : memref<25x4x8xf32, #tpu.memory_space<vmem>>, vector<1x4x8xf32>
    %283 = vector.shape_cast %282 : vector<1x4x8xf32> to vector<4x8xf32>
    %cst_126 = arith.constant dense<0.000000e+00> : vector<4x256xf32>
    %284 = tpu.matmul %283, %281, %cst_126 {dimension_numbers = #tpu.dot_dimension_numbers<[1], [0], [0], [1], [0, 0, 1, 1], [], []>} : vector<4x8xf32>, vector<8x256xf32>, vector<4x256xf32> -> vector<4x256xf32>
    %285 = arith.addf %275, %284 : vector<4x256xf32>
    %c32_i32_127 = arith.constant 32 : i32
    %286 = tpu.dynamic_rotate %264 by %c32_i32_127 dim 1 : vector<8x256xf32>, i32 -> vector<8x256xf32>
    %cst_128 = arith.constant 0.000000e+00 : f32
    %287 = vector.shape_cast %6 : vector<1x256xi1> to vector<1x256xi1>
    %288 = vector.broadcast %287 : vector<1x256xi1> to vector<8x256xi1>
    %289 = vector.broadcast %cst_128 : f32 to vector<8x256xf32>
    %290 = arith.select %288, %286, %289 : vector<8x256xi1>, vector<8x256xf32>
    %c2_129 = arith.constant 2 : index
    %c0_130 = arith.constant 0 : index
    %c0_131 = arith.constant 0 : index
    %291 = vector.load %arg4[%c2_129, %c0_130, %c0_131] : memref<25x4x8xf32, #tpu.memory_space<vmem>>, vector<1x4x8xf32>
    %292 = vector.shape_cast %291 : vector<1x4x8xf32> to vector<4x8xf32>
    %cst_132 = arith.constant dense<0.000000e+00> : vector<4x256xf32>
    %293 = tpu.matmul %292, %290, %cst_132 {dimension_numbers = #tpu.dot_dimension_numbers<[1], [0], [0], [1], [0, 0, 1, 1], [], []>} : vector<4x8xf32>, vector<8x256xf32>, vector<4x256xf32> -> vector<4x256xf32>
    %294 = arith.addf %285, %293 : vector<4x256xf32>
    %c31_i32_133 = arith.constant 31 : i32
    %295 = tpu.dynamic_rotate %264 by %c31_i32_133 dim 1 : vector<8x256xf32>, i32 -> vector<8x256xf32>
    %296 = arith.andi %6, %18 : vector<1x256xi1>
    %cst_134 = arith.constant 0.000000e+00 : f32
    %297 = vector.shape_cast %296 : vector<1x256xi1> to vector<1x256xi1>
    %298 = vector.broadcast %297 : vector<1x256xi1> to vector<8x256xi1>
    %299 = vector.broadcast %cst_134 : f32 to vector<8x256xf32>
    %300 = arith.select %298, %295, %299 : vector<8x256xi1>, vector<8x256xf32>
    %c3_135 = arith.constant 3 : index
    %c0_136 = arith.constant 0 : index
    %c0_137 = arith.constant 0 : index
    %301 = vector.load %arg4[%c3_135, %c0_136, %c0_137] : memref<25x4x8xf32, #tpu.memory_space<vmem>>, vector<1x4x8xf32>
    %302 = vector.shape_cast %301 : vector<1x4x8xf32> to vector<4x8xf32>
    %cst_138 = arith.constant dense<0.000000e+00> : vector<4x256xf32>
    %303 = tpu.matmul %302, %300, %cst_138 {dimension_numbers = #tpu.dot_dimension_numbers<[1], [0], [0], [1], [0, 0, 1, 1], [], []>} : vector<4x8xf32>, vector<8x256xf32>, vector<4x256xf32> -> vector<4x256xf32>
    %304 = arith.addf %294, %303 : vector<4x256xf32>
    %c30_i32_139 = arith.constant 30 : i32
    %305 = tpu.dynamic_rotate %264 by %c30_i32_139 dim 1 : vector<8x256xf32>, i32 -> vector<8x256xf32>
    %306 = arith.andi %6, %20 : vector<1x256xi1>
    %cst_140 = arith.constant 0.000000e+00 : f32
    %307 = vector.shape_cast %306 : vector<1x256xi1> to vector<1x256xi1>
    %308 = vector.broadcast %307 : vector<1x256xi1> to vector<8x256xi1>
    %309 = vector.broadcast %cst_140 : f32 to vector<8x256xf32>
    %310 = arith.select %308, %305, %309 : vector<8x256xi1>, vector<8x256xf32>
    %c4_141 = arith.constant 4 : index
    %c0_142 = arith.constant 0 : index
    %c0_143 = arith.constant 0 : index
    %311 = vector.load %arg4[%c4_141, %c0_142, %c0_143] : memref<25x4x8xf32, #tpu.memory_space<vmem>>, vector<1x4x8xf32>
    %312 = vector.shape_cast %311 : vector<1x4x8xf32> to vector<4x8xf32>
    %cst_144 = arith.constant dense<0.000000e+00> : vector<4x256xf32>
    %313 = tpu.matmul %312, %310, %cst_144 {dimension_numbers = #tpu.dot_dimension_numbers<[1], [0], [0], [1], [0, 0, 1, 1], [], []>} : vector<4x8xf32>, vector<8x256xf32>, vector<4x256xf32> -> vector<4x256xf32>
    %314 = arith.addf %304, %313 : vector<4x256xf32>
    %c18_i32_145 = arith.constant 18 : i32
    %315 = tpu.dynamic_rotate %264 by %c18_i32_145 dim 1 : vector<8x256xf32>, i32 -> vector<8x256xf32>
    %316 = arith.andi %8, %14 : vector<1x256xi1>
    %cst_146 = arith.constant 0.000000e+00 : f32
    %317 = vector.shape_cast %316 : vector<1x256xi1> to vector<1x256xi1>
    %318 = vector.broadcast %317 : vector<1x256xi1> to vector<8x256xi1>
    %319 = vector.broadcast %cst_146 : f32 to vector<8x256xf32>
    %320 = arith.select %318, %315, %319 : vector<8x256xi1>, vector<8x256xf32>
    %c5_147 = arith.constant 5 : index
    %c0_148 = arith.constant 0 : index
    %c0_149 = arith.constant 0 : index
    %321 = vector.load %arg4[%c5_147, %c0_148, %c0_149] : memref<25x4x8xf32, #tpu.memory_space<vmem>>, vector<1x4x8xf32>
    %322 = vector.shape_cast %321 : vector<1x4x8xf32> to vector<4x8xf32>
    %cst_150 = arith.constant dense<0.000000e+00> : vector<4x256xf32>
    %323 = tpu.matmul %322, %320, %cst_150 {dimension_numbers = #tpu.dot_dimension_numbers<[1], [0], [0], [1], [0, 0, 1, 1], [], []>} : vector<4x8xf32>, vector<8x256xf32>, vector<4x256xf32> -> vector<4x256xf32>
    %324 = arith.addf %314, %323 : vector<4x256xf32>
    %c17_i32_151 = arith.constant 17 : i32
    %325 = tpu.dynamic_rotate %264 by %c17_i32_151 dim 1 : vector<8x256xf32>, i32 -> vector<8x256xf32>
    %326 = arith.andi %8, %16 : vector<1x256xi1>
    %cst_152 = arith.constant 0.000000e+00 : f32
    %327 = vector.shape_cast %326 : vector<1x256xi1> to vector<1x256xi1>
    %328 = vector.broadcast %327 : vector<1x256xi1> to vector<8x256xi1>
    %329 = vector.broadcast %cst_152 : f32 to vector<8x256xf32>
    %330 = arith.select %328, %325, %329 : vector<8x256xi1>, vector<8x256xf32>
    %c6_153 = arith.constant 6 : index
    %c0_154 = arith.constant 0 : index
    %c0_155 = arith.constant 0 : index
    %331 = vector.load %arg4[%c6_153, %c0_154, %c0_155] : memref<25x4x8xf32, #tpu.memory_space<vmem>>, vector<1x4x8xf32>
    %332 = vector.shape_cast %331 : vector<1x4x8xf32> to vector<4x8xf32>
    %cst_156 = arith.constant dense<0.000000e+00> : vector<4x256xf32>
    %333 = tpu.matmul %332, %330, %cst_156 {dimension_numbers = #tpu.dot_dimension_numbers<[1], [0], [0], [1], [0, 0, 1, 1], [], []>} : vector<4x8xf32>, vector<8x256xf32>, vector<4x256xf32> -> vector<4x256xf32>
    %334 = arith.addf %324, %333 : vector<4x256xf32>
    %c16_i32_157 = arith.constant 16 : i32
    %335 = tpu.dynamic_rotate %264 by %c16_i32_157 dim 1 : vector<8x256xf32>, i32 -> vector<8x256xf32>
    %cst_158 = arith.constant 0.000000e+00 : f32
    %336 = vector.shape_cast %8 : vector<1x256xi1> to vector<1x256xi1>
    %337 = vector.broadcast %336 : vector<1x256xi1> to vector<8x256xi1>
    %338 = vector.broadcast %cst_158 : f32 to vector<8x256xf32>
    %339 = arith.select %337, %335, %338 : vector<8x256xi1>, vector<8x256xf32>
    %c7_159 = arith.constant 7 : index
    %c0_160 = arith.constant 0 : index
    %c0_161 = arith.constant 0 : index
    %340 = vector.load %arg4[%c7_159, %c0_160, %c0_161] : memref<25x4x8xf32, #tpu.memory_space<vmem>>, vector<1x4x8xf32>
    %341 = vector.shape_cast %340 : vector<1x4x8xf32> to vector<4x8xf32>
    %cst_162 = arith.constant dense<0.000000e+00> : vector<4x256xf32>
    %342 = tpu.matmul %341, %339, %cst_162 {dimension_numbers = #tpu.dot_dimension_numbers<[1], [0], [0], [1], [0, 0, 1, 1], [], []>} : vector<4x8xf32>, vector<8x256xf32>, vector<4x256xf32> -> vector<4x256xf32>
    %343 = arith.addf %334, %342 : vector<4x256xf32>
    %c15_i32_163 = arith.constant 15 : i32
    %344 = tpu.dynamic_rotate %264 by %c15_i32_163 dim 1 : vector<8x256xf32>, i32 -> vector<8x256xf32>
    %345 = arith.andi %8, %18 : vector<1x256xi1>
    %cst_164 = arith.constant 0.000000e+00 : f32
    %346 = vector.shape_cast %345 : vector<1x256xi1> to vector<1x256xi1>
    %347 = vector.broadcast %346 : vector<1x256xi1> to vector<8x256xi1>
    %348 = vector.broadcast %cst_164 : f32 to vector<8x256xf32>
    %349 = arith.select %347, %344, %348 : vector<8x256xi1>, vector<8x256xf32>
    %c8_165 = arith.constant 8 : index
    %c0_166 = arith.constant 0 : index
    %c0_167 = arith.constant 0 : index
    %350 = vector.load %arg4[%c8_165, %c0_166, %c0_167] : memref<25x4x8xf32, #tpu.memory_space<vmem>>, vector<1x4x8xf32>
    %351 = vector.shape_cast %350 : vector<1x4x8xf32> to vector<4x8xf32>
    %cst_168 = arith.constant dense<0.000000e+00> : vector<4x256xf32>
    %352 = tpu.matmul %351, %349, %cst_168 {dimension_numbers = #tpu.dot_dimension_numbers<[1], [0], [0], [1], [0, 0, 1, 1], [], []>} : vector<4x8xf32>, vector<8x256xf32>, vector<4x256xf32> -> vector<4x256xf32>
    %353 = arith.addf %343, %352 : vector<4x256xf32>
    %c14_i32_169 = arith.constant 14 : i32
    %354 = tpu.dynamic_rotate %264 by %c14_i32_169 dim 1 : vector<8x256xf32>, i32 -> vector<8x256xf32>
    %355 = arith.andi %8, %20 : vector<1x256xi1>
    %cst_170 = arith.constant 0.000000e+00 : f32
    %356 = vector.shape_cast %355 : vector<1x256xi1> to vector<1x256xi1>
    %357 = vector.broadcast %356 : vector<1x256xi1> to vector<8x256xi1>
    %358 = vector.broadcast %cst_170 : f32 to vector<8x256xf32>
    %359 = arith.select %357, %354, %358 : vector<8x256xi1>, vector<8x256xf32>
    %c9_171 = arith.constant 9 : index
    %c0_172 = arith.constant 0 : index
    %c0_173 = arith.constant 0 : index
    %360 = vector.load %arg4[%c9_171, %c0_172, %c0_173] : memref<25x4x8xf32, #tpu.memory_space<vmem>>, vector<1x4x8xf32>
    %361 = vector.shape_cast %360 : vector<1x4x8xf32> to vector<4x8xf32>
    %cst_174 = arith.constant dense<0.000000e+00> : vector<4x256xf32>
    %362 = tpu.matmul %361, %359, %cst_174 {dimension_numbers = #tpu.dot_dimension_numbers<[1], [0], [0], [1], [0, 0, 1, 1], [], []>} : vector<4x8xf32>, vector<8x256xf32>, vector<4x256xf32> -> vector<4x256xf32>
    %363 = arith.addf %353, %362 : vector<4x256xf32>
    %c2_i32_175 = arith.constant 2 : i32
    %364 = tpu.dynamic_rotate %264 by %c2_i32_175 dim 1 : vector<8x256xf32>, i32 -> vector<8x256xf32>
    %cst_176 = arith.constant 0.000000e+00 : f32
    %365 = vector.shape_cast %14 : vector<1x256xi1> to vector<1x256xi1>
    %366 = vector.broadcast %365 : vector<1x256xi1> to vector<8x256xi1>
    %367 = vector.broadcast %cst_176 : f32 to vector<8x256xf32>
    %368 = arith.select %366, %364, %367 : vector<8x256xi1>, vector<8x256xf32>
    %c10_177 = arith.constant 10 : index
    %c0_178 = arith.constant 0 : index
    %c0_179 = arith.constant 0 : index
    %369 = vector.load %arg4[%c10_177, %c0_178, %c0_179] : memref<25x4x8xf32, #tpu.memory_space<vmem>>, vector<1x4x8xf32>
    %370 = vector.shape_cast %369 : vector<1x4x8xf32> to vector<4x8xf32>
    %cst_180 = arith.constant dense<0.000000e+00> : vector<4x256xf32>
    %371 = tpu.matmul %370, %368, %cst_180 {dimension_numbers = #tpu.dot_dimension_numbers<[1], [0], [0], [1], [0, 0, 1, 1], [], []>} : vector<4x8xf32>, vector<8x256xf32>, vector<4x256xf32> -> vector<4x256xf32>
    %372 = arith.addf %363, %371 : vector<4x256xf32>
    %c1_i32_181 = arith.constant 1 : i32
    %373 = tpu.dynamic_rotate %264 by %c1_i32_181 dim 1 : vector<8x256xf32>, i32 -> vector<8x256xf32>
    %cst_182 = arith.constant 0.000000e+00 : f32
    %374 = vector.shape_cast %16 : vector<1x256xi1> to vector<1x256xi1>
    %375 = vector.broadcast %374 : vector<1x256xi1> to vector<8x256xi1>
    %376 = vector.broadcast %cst_182 : f32 to vector<8x256xf32>
    %377 = arith.select %375, %373, %376 : vector<8x256xi1>, vector<8x256xf32>
    %c11_183 = arith.constant 11 : index
    %c0_184 = arith.constant 0 : index
    %c0_185 = arith.constant 0 : index
    %378 = vector.load %arg4[%c11_183, %c0_184, %c0_185] : memref<25x4x8xf32, #tpu.memory_space<vmem>>, vector<1x4x8xf32>
    %379 = vector.shape_cast %378 : vector<1x4x8xf32> to vector<4x8xf32>
    %cst_186 = arith.constant dense<0.000000e+00> : vector<4x256xf32>
    %380 = tpu.matmul %379, %377, %cst_186 {dimension_numbers = #tpu.dot_dimension_numbers<[1], [0], [0], [1], [0, 0, 1, 1], [], []>} : vector<4x8xf32>, vector<8x256xf32>, vector<4x256xf32> -> vector<4x256xf32>
    %381 = arith.addf %372, %380 : vector<4x256xf32>
    %c12_187 = arith.constant 12 : index
    %c0_188 = arith.constant 0 : index
    %c0_189 = arith.constant 0 : index
    %382 = vector.load %arg4[%c12_187, %c0_188, %c0_189] : memref<25x4x8xf32, #tpu.memory_space<vmem>>, vector<1x4x8xf32>
    %383 = vector.shape_cast %382 : vector<1x4x8xf32> to vector<4x8xf32>
    %cst_190 = arith.constant dense<0.000000e+00> : vector<4x256xf32>
    %384 = tpu.matmul %383, %264, %cst_190 {dimension_numbers = #tpu.dot_dimension_numbers<[1], [0], [0], [1], [0, 0, 1, 1], [], []>} : vector<4x8xf32>, vector<8x256xf32>, vector<4x256xf32> -> vector<4x256xf32>
    %385 = arith.addf %381, %384 : vector<4x256xf32>
    %c255_i32_191 = arith.constant 255 : i32
    %386 = tpu.dynamic_rotate %264 by %c255_i32_191 dim 1 : vector<8x256xf32>, i32 -> vector<8x256xf32>
    %cst_192 = arith.constant 0.000000e+00 : f32
    %387 = vector.shape_cast %18 : vector<1x256xi1> to vector<1x256xi1>
    %388 = vector.broadcast %387 : vector<1x256xi1> to vector<8x256xi1>
    %389 = vector.broadcast %cst_192 : f32 to vector<8x256xf32>
    %390 = arith.select %388, %386, %389 : vector<8x256xi1>, vector<8x256xf32>
    %c13_193 = arith.constant 13 : index
    %c0_194 = arith.constant 0 : index
    %c0_195 = arith.constant 0 : index
    %391 = vector.load %arg4[%c13_193, %c0_194, %c0_195] : memref<25x4x8xf32, #tpu.memory_space<vmem>>, vector<1x4x8xf32>
    %392 = vector.shape_cast %391 : vector<1x4x8xf32> to vector<4x8xf32>
    %cst_196 = arith.constant dense<0.000000e+00> : vector<4x256xf32>
    %393 = tpu.matmul %392, %390, %cst_196 {dimension_numbers = #tpu.dot_dimension_numbers<[1], [0], [0], [1], [0, 0, 1, 1], [], []>} : vector<4x8xf32>, vector<8x256xf32>, vector<4x256xf32> -> vector<4x256xf32>
    %394 = arith.addf %385, %393 : vector<4x256xf32>
    %c254_i32_197 = arith.constant 254 : i32
    %395 = tpu.dynamic_rotate %264 by %c254_i32_197 dim 1 : vector<8x256xf32>, i32 -> vector<8x256xf32>
    %cst_198 = arith.constant 0.000000e+00 : f32
    %396 = vector.shape_cast %20 : vector<1x256xi1> to vector<1x256xi1>
    %397 = vector.broadcast %396 : vector<1x256xi1> to vector<8x256xi1>
    %398 = vector.broadcast %cst_198 : f32 to vector<8x256xf32>
    %399 = arith.select %397, %395, %398 : vector<8x256xi1>, vector<8x256xf32>
    %c14_199 = arith.constant 14 : index
    %c0_200 = arith.constant 0 : index
    %c0_201 = arith.constant 0 : index
    %400 = vector.load %arg4[%c14_199, %c0_200, %c0_201] : memref<25x4x8xf32, #tpu.memory_space<vmem>>, vector<1x4x8xf32>
    %401 = vector.shape_cast %400 : vector<1x4x8xf32> to vector<4x8xf32>
    %cst_202 = arith.constant dense<0.000000e+00> : vector<4x256xf32>
    %402 = tpu.matmul %401, %399, %cst_202 {dimension_numbers = #tpu.dot_dimension_numbers<[1], [0], [0], [1], [0, 0, 1, 1], [], []>} : vector<4x8xf32>, vector<8x256xf32>, vector<4x256xf32> -> vector<4x256xf32>
    %403 = arith.addf %394, %402 : vector<4x256xf32>
    %c242_i32_203 = arith.constant 242 : i32
    %404 = tpu.dynamic_rotate %264 by %c242_i32_203 dim 1 : vector<8x256xf32>, i32 -> vector<8x256xf32>
    %405 = arith.andi %10, %14 : vector<1x256xi1>
    %cst_204 = arith.constant 0.000000e+00 : f32
    %406 = vector.shape_cast %405 : vector<1x256xi1> to vector<1x256xi1>
    %407 = vector.broadcast %406 : vector<1x256xi1> to vector<8x256xi1>
    %408 = vector.broadcast %cst_204 : f32 to vector<8x256xf32>
    %409 = arith.select %407, %404, %408 : vector<8x256xi1>, vector<8x256xf32>
    %c15_205 = arith.constant 15 : index
    %c0_206 = arith.constant 0 : index
    %c0_207 = arith.constant 0 : index
    %410 = vector.load %arg4[%c15_205, %c0_206, %c0_207] : memref<25x4x8xf32, #tpu.memory_space<vmem>>, vector<1x4x8xf32>
    %411 = vector.shape_cast %410 : vector<1x4x8xf32> to vector<4x8xf32>
    %cst_208 = arith.constant dense<0.000000e+00> : vector<4x256xf32>
    %412 = tpu.matmul %411, %409, %cst_208 {dimension_numbers = #tpu.dot_dimension_numbers<[1], [0], [0], [1], [0, 0, 1, 1], [], []>} : vector<4x8xf32>, vector<8x256xf32>, vector<4x256xf32> -> vector<4x256xf32>
    %413 = arith.addf %403, %412 : vector<4x256xf32>
    %c241_i32_209 = arith.constant 241 : i32
    %414 = tpu.dynamic_rotate %264 by %c241_i32_209 dim 1 : vector<8x256xf32>, i32 -> vector<8x256xf32>
    %415 = arith.andi %10, %16 : vector<1x256xi1>
    %cst_210 = arith.constant 0.000000e+00 : f32
    %416 = vector.shape_cast %415 : vector<1x256xi1> to vector<1x256xi1>
    %417 = vector.broadcast %416 : vector<1x256xi1> to vector<8x256xi1>
    %418 = vector.broadcast %cst_210 : f32 to vector<8x256xf32>
    %419 = arith.select %417, %414, %418 : vector<8x256xi1>, vector<8x256xf32>
    %c16_211 = arith.constant 16 : index
    %c0_212 = arith.constant 0 : index
    %c0_213 = arith.constant 0 : index
    %420 = vector.load %arg4[%c16_211, %c0_212, %c0_213] : memref<25x4x8xf32, #tpu.memory_space<vmem>>, vector<1x4x8xf32>
    %421 = vector.shape_cast %420 : vector<1x4x8xf32> to vector<4x8xf32>
    %cst_214 = arith.constant dense<0.000000e+00> : vector<4x256xf32>
    %422 = tpu.matmul %421, %419, %cst_214 {dimension_numbers = #tpu.dot_dimension_numbers<[1], [0], [0], [1], [0, 0, 1, 1], [], []>} : vector<4x8xf32>, vector<8x256xf32>, vector<4x256xf32> -> vector<4x256xf32>
    %423 = arith.addf %413, %422 : vector<4x256xf32>
    %c240_i32_215 = arith.constant 240 : i32
    %424 = tpu.dynamic_rotate %264 by %c240_i32_215 dim 1 : vector<8x256xf32>, i32 -> vector<8x256xf32>
    %cst_216 = arith.constant 0.000000e+00 : f32
    %425 = vector.shape_cast %10 : vector<1x256xi1> to vector<1x256xi1>
    %426 = vector.broadcast %425 : vector<1x256xi1> to vector<8x256xi1>
    %427 = vector.broadcast %cst_216 : f32 to vector<8x256xf32>
    %428 = arith.select %426, %424, %427 : vector<8x256xi1>, vector<8x256xf32>
    %c17_217 = arith.constant 17 : index
    %c0_218 = arith.constant 0 : index
    %c0_219 = arith.constant 0 : index
    %429 = vector.load %arg4[%c17_217, %c0_218, %c0_219] : memref<25x4x8xf32, #tpu.memory_space<vmem>>, vector<1x4x8xf32>
    %430 = vector.shape_cast %429 : vector<1x4x8xf32> to vector<4x8xf32>
    %cst_220 = arith.constant dense<0.000000e+00> : vector<4x256xf32>
    %431 = tpu.matmul %430, %428, %cst_220 {dimension_numbers = #tpu.dot_dimension_numbers<[1], [0], [0], [1], [0, 0, 1, 1], [], []>} : vector<4x8xf32>, vector<8x256xf32>, vector<4x256xf32> -> vector<4x256xf32>
    %432 = arith.addf %423, %431 : vector<4x256xf32>
    %c239_i32_221 = arith.constant 239 : i32
    %433 = tpu.dynamic_rotate %264 by %c239_i32_221 dim 1 : vector<8x256xf32>, i32 -> vector<8x256xf32>
    %434 = arith.andi %10, %18 : vector<1x256xi1>
    %cst_222 = arith.constant 0.000000e+00 : f32
    %435 = vector.shape_cast %434 : vector<1x256xi1> to vector<1x256xi1>
    %436 = vector.broadcast %435 : vector<1x256xi1> to vector<8x256xi1>
    %437 = vector.broadcast %cst_222 : f32 to vector<8x256xf32>
    %438 = arith.select %436, %433, %437 : vector<8x256xi1>, vector<8x256xf32>
    %c18_223 = arith.constant 18 : index
    %c0_224 = arith.constant 0 : index
    %c0_225 = arith.constant 0 : index
    %439 = vector.load %arg4[%c18_223, %c0_224, %c0_225] : memref<25x4x8xf32, #tpu.memory_space<vmem>>, vector<1x4x8xf32>
    %440 = vector.shape_cast %439 : vector<1x4x8xf32> to vector<4x8xf32>
    %cst_226 = arith.constant dense<0.000000e+00> : vector<4x256xf32>
    %441 = tpu.matmul %440, %438, %cst_226 {dimension_numbers = #tpu.dot_dimension_numbers<[1], [0], [0], [1], [0, 0, 1, 1], [], []>} : vector<4x8xf32>, vector<8x256xf32>, vector<4x256xf32> -> vector<4x256xf32>
    %442 = arith.addf %432, %441 : vector<4x256xf32>
    %c238_i32_227 = arith.constant 238 : i32
    %443 = tpu.dynamic_rotate %264 by %c238_i32_227 dim 1 : vector<8x256xf32>, i32 -> vector<8x256xf32>
    %444 = arith.andi %10, %20 : vector<1x256xi1>
    %cst_228 = arith.constant 0.000000e+00 : f32
    %445 = vector.shape_cast %444 : vector<1x256xi1> to vector<1x256xi1>
    %446 = vector.broadcast %445 : vector<1x256xi1> to vector<8x256xi1>
    %447 = vector.broadcast %cst_228 : f32 to vector<8x256xf32>
    %448 = arith.select %446, %443, %447 : vector<8x256xi1>, vector<8x256xf32>
    %c19_229 = arith.constant 19 : index
    %c0_230 = arith.constant 0 : index
    %c0_231 = arith.constant 0 : index
    %449 = vector.load %arg4[%c19_229, %c0_230, %c0_231] : memref<25x4x8xf32, #tpu.memory_space<vmem>>, vector<1x4x8xf32>
    %450 = vector.shape_cast %449 : vector<1x4x8xf32> to vector<4x8xf32>
    %cst_232 = arith.constant dense<0.000000e+00> : vector<4x256xf32>
    %451 = tpu.matmul %450, %448, %cst_232 {dimension_numbers = #tpu.dot_dimension_numbers<[1], [0], [0], [1], [0, 0, 1, 1], [], []>} : vector<4x8xf32>, vector<8x256xf32>, vector<4x256xf32> -> vector<4x256xf32>
    %452 = arith.addf %442, %451 : vector<4x256xf32>
    %c226_i32_233 = arith.constant 226 : i32
    %453 = tpu.dynamic_rotate %264 by %c226_i32_233 dim 1 : vector<8x256xf32>, i32 -> vector<8x256xf32>
    %454 = arith.andi %12, %14 : vector<1x256xi1>
    %cst_234 = arith.constant 0.000000e+00 : f32
    %455 = vector.shape_cast %454 : vector<1x256xi1> to vector<1x256xi1>
    %456 = vector.broadcast %455 : vector<1x256xi1> to vector<8x256xi1>
    %457 = vector.broadcast %cst_234 : f32 to vector<8x256xf32>
    %458 = arith.select %456, %453, %457 : vector<8x256xi1>, vector<8x256xf32>
    %c20_235 = arith.constant 20 : index
    %c0_236 = arith.constant 0 : index
    %c0_237 = arith.constant 0 : index
    %459 = vector.load %arg4[%c20_235, %c0_236, %c0_237] : memref<25x4x8xf32, #tpu.memory_space<vmem>>, vector<1x4x8xf32>
    %460 = vector.shape_cast %459 : vector<1x4x8xf32> to vector<4x8xf32>
    %cst_238 = arith.constant dense<0.000000e+00> : vector<4x256xf32>
    %461 = tpu.matmul %460, %458, %cst_238 {dimension_numbers = #tpu.dot_dimension_numbers<[1], [0], [0], [1], [0, 0, 1, 1], [], []>} : vector<4x8xf32>, vector<8x256xf32>, vector<4x256xf32> -> vector<4x256xf32>
    %462 = arith.addf %452, %461 : vector<4x256xf32>
    %c225_i32_239 = arith.constant 225 : i32
    %463 = tpu.dynamic_rotate %264 by %c225_i32_239 dim 1 : vector<8x256xf32>, i32 -> vector<8x256xf32>
    %464 = arith.andi %12, %16 : vector<1x256xi1>
    %cst_240 = arith.constant 0.000000e+00 : f32
    %465 = vector.shape_cast %464 : vector<1x256xi1> to vector<1x256xi1>
    %466 = vector.broadcast %465 : vector<1x256xi1> to vector<8x256xi1>
    %467 = vector.broadcast %cst_240 : f32 to vector<8x256xf32>
    %468 = arith.select %466, %463, %467 : vector<8x256xi1>, vector<8x256xf32>
    %c21_241 = arith.constant 21 : index
    %c0_242 = arith.constant 0 : index
    %c0_243 = arith.constant 0 : index
    %469 = vector.load %arg4[%c21_241, %c0_242, %c0_243] : memref<25x4x8xf32, #tpu.memory_space<vmem>>, vector<1x4x8xf32>
    %470 = vector.shape_cast %469 : vector<1x4x8xf32> to vector<4x8xf32>
    %cst_244 = arith.constant dense<0.000000e+00> : vector<4x256xf32>
    %471 = tpu.matmul %470, %468, %cst_244 {dimension_numbers = #tpu.dot_dimension_numbers<[1], [0], [0], [1], [0, 0, 1, 1], [], []>} : vector<4x8xf32>, vector<8x256xf32>, vector<4x256xf32> -> vector<4x256xf32>
    %472 = arith.addf %462, %471 : vector<4x256xf32>
    %c224_i32_245 = arith.constant 224 : i32
    %473 = tpu.dynamic_rotate %264 by %c224_i32_245 dim 1 : vector<8x256xf32>, i32 -> vector<8x256xf32>
    %cst_246 = arith.constant 0.000000e+00 : f32
    %474 = vector.shape_cast %12 : vector<1x256xi1> to vector<1x256xi1>
    %475 = vector.broadcast %474 : vector<1x256xi1> to vector<8x256xi1>
    %476 = vector.broadcast %cst_246 : f32 to vector<8x256xf32>
    %477 = arith.select %475, %473, %476 : vector<8x256xi1>, vector<8x256xf32>
    %c22_247 = arith.constant 22 : index
    %c0_248 = arith.constant 0 : index
    %c0_249 = arith.constant 0 : index
    %478 = vector.load %arg4[%c22_247, %c0_248, %c0_249] : memref<25x4x8xf32, #tpu.memory_space<vmem>>, vector<1x4x8xf32>
    %479 = vector.shape_cast %478 : vector<1x4x8xf32> to vector<4x8xf32>
    %cst_250 = arith.constant dense<0.000000e+00> : vector<4x256xf32>
    %480 = tpu.matmul %479, %477, %cst_250 {dimension_numbers = #tpu.dot_dimension_numbers<[1], [0], [0], [1], [0, 0, 1, 1], [], []>} : vector<4x8xf32>, vector<8x256xf32>, vector<4x256xf32> -> vector<4x256xf32>
    %481 = arith.addf %472, %480 : vector<4x256xf32>
    %c223_i32_251 = arith.constant 223 : i32
    %482 = tpu.dynamic_rotate %264 by %c223_i32_251 dim 1 : vector<8x256xf32>, i32 -> vector<8x256xf32>
    %483 = arith.andi %12, %18 : vector<1x256xi1>
    %cst_252 = arith.constant 0.000000e+00 : f32
    %484 = vector.shape_cast %483 : vector<1x256xi1> to vector<1x256xi1>
    %485 = vector.broadcast %484 : vector<1x256xi1> to vector<8x256xi1>
    %486 = vector.broadcast %cst_252 : f32 to vector<8x256xf32>
    %487 = arith.select %485, %482, %486 : vector<8x256xi1>, vector<8x256xf32>
    %c23_253 = arith.constant 23 : index
    %c0_254 = arith.constant 0 : index
    %c0_255 = arith.constant 0 : index
    %488 = vector.load %arg4[%c23_253, %c0_254, %c0_255] : memref<25x4x8xf32, #tpu.memory_space<vmem>>, vector<1x4x8xf32>
    %489 = vector.shape_cast %488 : vector<1x4x8xf32> to vector<4x8xf32>
    %cst_256 = arith.constant dense<0.000000e+00> : vector<4x256xf32>
    %490 = tpu.matmul %489, %487, %cst_256 {dimension_numbers = #tpu.dot_dimension_numbers<[1], [0], [0], [1], [0, 0, 1, 1], [], []>} : vector<4x8xf32>, vector<8x256xf32>, vector<4x256xf32> -> vector<4x256xf32>
    %491 = arith.addf %481, %490 : vector<4x256xf32>
    %c222_i32_257 = arith.constant 222 : i32
    %492 = tpu.dynamic_rotate %264 by %c222_i32_257 dim 1 : vector<8x256xf32>, i32 -> vector<8x256xf32>
    %493 = arith.andi %12, %20 : vector<1x256xi1>
    %cst_258 = arith.constant 0.000000e+00 : f32
    %494 = vector.shape_cast %493 : vector<1x256xi1> to vector<1x256xi1>
    %495 = vector.broadcast %494 : vector<1x256xi1> to vector<8x256xi1>
    %496 = vector.broadcast %cst_258 : f32 to vector<8x256xf32>
    %497 = arith.select %495, %492, %496 : vector<8x256xi1>, vector<8x256xf32>
    %c24_259 = arith.constant 24 : index
    %c0_260 = arith.constant 0 : index
    %c0_261 = arith.constant 0 : index
    %498 = vector.load %arg4[%c24_259, %c0_260, %c0_261] : memref<25x4x8xf32, #tpu.memory_space<vmem>>, vector<1x4x8xf32>
    %499 = vector.shape_cast %498 : vector<1x4x8xf32> to vector<4x8xf32>
    %cst_262 = arith.constant dense<0.000000e+00> : vector<4x256xf32>
    %500 = tpu.matmul %499, %497, %cst_262 {dimension_numbers = #tpu.dot_dimension_numbers<[1], [0], [0], [1], [0, 0, 1, 1], [], []>} : vector<4x8xf32>, vector<8x256xf32>, vector<4x256xf32> -> vector<4x256xf32>
    %501 = arith.addf %491, %500 : vector<4x256xf32>
    %c0_263 = arith.constant 0 : index
    %c0_264 = arith.constant 0 : index
    %502 = vector.load %arg5[%c0_263, %c0_264] : memref<4x1xf32, #tpu.memory_space<vmem>>, vector<4x1xf32>
    %503 = vector.broadcast %502 : vector<4x1xf32> to vector<4x256xf32>
    %504 = arith.addf %501, %503 : vector<4x256xf32>
    %cst_265 = arith.constant 0.000000e+00 : f32
    %505 = vector.broadcast %cst_265 : f32 to vector<4x256xf32>
    %506 = arith.maximumf %504, %505 : vector<4x256xf32>
    %c0_266 = arith.constant 0 : index
    %c0_267 = arith.constant 0 : index
    %c0_268 = arith.constant 0 : index
    %507 = vector.load %arg6[%c0_266, %c0_267, %c0_268] : memref<1x4x256xf32, #tpu.memory_space<vmem>>, vector<1x4x256xf32>
    %508 = vector.shape_cast %507 : vector<1x4x256xf32> to vector<4x256xf32>
    %509 = vector.shape_cast %506 : vector<4x256xf32> to vector<1x4x256xf32>
    tpu.vector_store %arg6[%c0_266, %c0_267, %c0_268], %509 {strides = array<i32>} : memref<1x4x256xf32, #tpu.memory_space<vmem>>, vector<1x4x256xf32>,
    return
  }
  func.func @transform_0(%arg0: i32) -> (i32, i32, i32) {
    %c0_i32 = arith.constant 0 : i32
    %c0_i32_0 = arith.constant 0 : i32
    %c0_i32_1 = arith.constant 0 : i32
    return %arg0, %c0_i32, %c0_i32_0 : i32, i32, i32
  }
  func.func @transform_1(%arg0: i32) -> (i32, i32, i32) {
    %c0_i32 = arith.constant 0 : i32
    %c0_i32_0 = arith.constant 0 : i32
    %c0_i32_1 = arith.constant 0 : i32
    %c0_i32_2 = arith.constant 0 : i32
    return %c0_i32, %c0_i32_0, %c0_i32_1 : i32, i32, i32
  }
  func.func @transform_2(%arg0: i32) -> (i32, i32) {
    %c0_i32 = arith.constant 0 : i32
    %c0_i32_0 = arith.constant 0 : i32
    %c0_i32_1 = arith.constant 0 : i32
    return %c0_i32, %c0_i32_0 : i32, i32
  }
  func.func @transform_3(%arg0: i32) -> (i32, i32, i32) {
    %c0_i32 = arith.constant 0 : i32
    %c0_i32_0 = arith.constant 0 : i32
    %c0_i32_1 = arith.constant 0 : i32
    %c0_i32_2 = arith.constant 0 : i32
    return %c0_i32, %c0_i32_0, %c0_i32_1 : i32, i32, i32
  }
  func.func @transform_4(%arg0: i32) -> (i32, i32) {
    %c0_i32 = arith.constant 0 : i32
    %c0_i32_0 = arith.constant 0 : i32
    %c0_i32_1 = arith.constant 0 : i32
    return %c0_i32, %c0_i32_0 : i32, i32
  }
  func.func @transform_5(%arg0: i32) -> (i32, i32, i32) {
    %c0_i32 = arith.constant 0 : i32
    %c0_i32_0 = arith.constant 0 : i32
    %c0_i32_1 = arith.constant 0 : i32
    return %arg0, %c0_i32, %c0_i32_0 : i32, i32, i32
  }
}

</mosaic_0001>

<bundles_post_ra>
// kernel: a_call__.1
= control target key start
LH: loop header
LB: loop body
LE: loop exit
PB: predicated region body
PF: predicated region fallthrough
CT: control target
= control target key end

     0   :  { %10 = vsyncpa [#allocation3], 0  ;;  %s5367_s18 = smov 0   ;;  %s6560_s0 = inlined_call_operand.vmem [shape: f32[2,4,256], index: 0, kind: input, shape index: {}]   ;;  %s6561_s1 = inlined_call_operand.hbm [shape: f32[25,8,4], index: 1, kind: input, shape index: {}]   ;;  %s6562_s2 = inlined_call_operand.vmem [shape: f32[8,1], index: 2, kind: input, shape index: {}]   ;;  %s6563_s3 = inlined_call_operand.vmem [shape: f32[25,4,8], index: 3, kind: input, shape index: {}]   ;;  %s6564_s4 = inlined_call_operand.vmem [shape: f32[4,1], index: 4, kind: input, shape index: {}]   ;;  %s6565_s5 = inlined_call_operand.vmem [shape: f32[2,4,256], index: 5, kind: output, shape index: {}]  }
   0x1 LB: > { %s5373_s19 = sadd.s32 4294967295, %s5306_s18   ;;  %p4938_p0 = scmp.ge.s32.totalorder %s5306_s18, 1  ;;  %s5306_s18 = sphi %s5367_s18, %s16_s18  }
   0x2   : > { %p157_p1 = scmp.lt.s32.totalorder %s5306_s18, 3  ;;  %s5308_s20 = smov [#allocation2]  }
   0x3   : > { %s169_s21 = sshll.u32 %s5308_s20, 4  ;;  %p6566_p3 = scmp.eq.s32.totalorder %s5373_s19, 0  ;;  %s170_s21 = int_to_ptr.vmem [resolvable:$true] %s169_s21 }
   0x4   : > { %p5377_p2 = pnand %p4938_p0, %p157_p1  ;;  %s5268_s26 = scalar_lea.hbm %s6561_s1, 3200 }
   0x5   : > { %p5269_p6 = scmp.ne.s32.totalorder %s6561_s1, %s5268_s26  ;;  %p5275_p10 = scmp.lt.u32.totalorder %s5268_s26, %s6561_s1 }
   0x6   : > { %s6638_s22 = scalar_select %p5377_p2, 1, 0 }
   0x7   : > { %p5223_p4 = pneg %p5377_p2 }
   0x9   : > { %p5386_p5 = pnand %p6566_p3, %p5223_p4 }
   0xb   : > { %p5270_p7 = pneg %p5386_p5 }
   0xd   : > { %p5271_p8 = pnand %p5270_p7, %p5269_p6 }
   0xf   : > { %p5272_p9 = pneg %p5271_p8 }
  0x11   : > { %p5277_p11 = pnand %p5275_p10, %p5272_p9 }
  0x13   : > { %5280 = shalt.err (!%p5277_p11)
}
  0x14   : > { %s5281_s6 = scalar_lea.vmem %s170_s21, 3200  ;;  %p5289_p1 = scmp.lt.s32.totalorder %s170_s21, %s170_s21 }
  0x15   : > { %p5282_p12 = scmp.ne.s32.totalorder %s170_s21, %s5281_s6  ;;  %p5290_p4 = scmp.lt.s32.totalorder %s5281_s6, %s5281_s6 }
  0x17   : > { %p5284_p13 = pnand %p5282_p12, %p5270_p7  ;;  %p5291_p3 = por %p5290_p4, %p5289_p1 }
  0x19   : > { %p5285_p0 = pneg %p5284_p13 }
  0x1b   : > { %p5292_p2 = pnand %p5291_p3, %p5285_p0 }
  0x1d   : > { %5295 = shalt.err (!%p5292_p2)
}
  0x1e   : > { %s5309_s7 = smov 128   ;;  %s5310_s8 = smov 8  }
  0x1f   : > { %5226 = dma.hbm_to_vmem [thread:$0]  (!%p5386_p5), %s6561_s1, 3200, %s170_s21, [#allocation3], %s5309_s7, %s5309_s7, %s5310_s8  }
  0x20   : > { %p6640_p6 = scmp.ne.s32.totalorder %s6638_s22, 0 }
  0x21   : > { %p6641_p8 = scmp.eq.s32.totalorder (!%p6640_p6), %s5373_s19, 0 }
  0x22   : > { %202 = sbr.rel (%p6640_p6) target bundleno = 1113 (0x459), region = 40 }
  0x29   : > { %5301 = dma.done.wait (%p6641_p8), [#allocation3], 3200   ;;  %p6642_p7 = pmov %p6641_p8 }
  0x2a   : > { %p230_p2 = scmp.lt.s32.totalorder %s5373_s19, 1  ;;  %v5311_v0 = vmov 0.0   ;;  %s5312_s15 = smov 34   ;;  %v240_v3 = vlaneseq  ;;  %vm6591_vm12 = vcmask 1043456   ;;  %vm6582_vm13 = vcmask 31744   ;;  %v299_v25 = vld [vmem:[#allocation2 + $0x8] sm:$0xff] }
  0x2b   : > { %5303 = vsyncadd (%p6642_p7), [#allocation3], 4294964096  ;;  %375 = vmatprep.mubr.f32.mxu0 %v5311_v0  ;;  %2803 = vmatprep.mubr.f32.mxu1 %v5311_v0  ;;  %s5313_s16 = smov 33   ;;  %s5314_s17 = smov 32   ;;  %v282_v36 = vld [vmem:[#allocation2] sm:$0xff]  ;;  %v476_v45 = vld [vmem:[#allocation2 + $0x10] sm:$0xff] }
  0x2c   : > { %s6905_s19 = smov (!%p230_p2, %s5373_s19), 1  ;;  %s5315_s20 = smov 31   ;;  %v5526_v4 = vand.u32 127, %v240_v3  ;;  %v6657_v50 = vmov 0  ;;  %v6659_v52 = vmov 0  ;;  %v575_v54 = vld [vmem:[#allocation2 + $0x18] sm:$0xff] }
  0x2d   : > { %s6568_s11 = sshll.u32 %s6905_s19, 3  ;;  %s5316_s21 = smov 30   ;;  %v6663_v59 = vmov 0  ;;  %v6667_v61 = vmov 0  ;;  %v674_v63 = vld [vmem:[#allocation2 + $0x20] sm:$0xff] }
  0x2e   : > { %s234_s14 = scalar_lea.vmem %s6560_s0, %s6568_s11  ;;  %s5317_s22 = smov 18   ;;  %v242_v5 = vadd.s32 128, %v5526_v4  ;;  %v5530_v6 = vshra.s32 %v5526_v4, 4  ;;  %v5533_v7 = vand.u32 15, %v5526_v4  ;;  %vm6571_vm7 = vcmp.lt.s32.totalorder %v5526_v4, 34 }
  0x2f   : > { %v5424_v1 = vld [vmem:[%s234_s14] sm:$0xff]  ;;  %s5318_s23 = smov 17   ;;  %s5319_s24 = smov 16   ;;  %vm6572_vm9 = vcmp.lt.s32.totalorder %v5526_v4, 33  ;;  %vm6573_vm14 = vcmp.lt.s32.totalorder %v5526_v4, 32 }
  0x30   : > { %267 = vrot.lane.b32.xlu1 %v5424_v1, %s5312_s15  ;;  %283 = vrot.lane.b32.xlu0 %v5424_v1, %s5313_s16  ;;  %v5432_v2 = vcombine.high %v5424_v1, %v5424_v1  ;;  %s5320_s25 = smov 15   ;;  %s5321_s26 = smov 14   ;;  %v5535_v8 = vshra.s32 %v242_v5, 4  ;;  %v5537_v9 = vand.u32 15, %v242_v5  ;;  %vm6583_vm0 = vcmp.ge.s32.totalorder %v5530_v6, 2 }
  0x31   : > { %s5322_s27 = smov 2   ;;  %s5323_s28 = smov 1   ;;  %vm6575_vm1 = vcmp.ge.s32.totalorder %v5533_v7, 1  ;;  %vm6577_vm5 = vcmp.ge.s32.totalorder %v5533_v7, 2  ;;  %v5033_v34 = vld [vmem:[%s6563_s3 + $0xc] sm:$0xf] }
  0x32   : > { %s5324_s29 = smov 127   ;;  %s5325_s30 = smov 126   ;;  %vm6585_vm2 = vcmp.ge.s32.totalorder %v5537_v9, 2  ;;  %vm6579_vm3 = vcmp.ge.s32.totalorder %v5535_v8, 2  ;;  %vm6576_vm4 = vcmp.ge.s32.totalorder %v5537_v9, 1  ;;  %vm5549_vm6 = vmand %vm6583_vm0, %vm6575_vm1  ;;  %vm6574_vm15 = vcmp.lt.s32.totalorder %v5537_v9, 15 }
  0x33   : > { %s5326_s6 = smov 114   ;;  %s5327_s7 = smov 113   ;;  %vm5558_vm8 = vmand %vm6579_vm3, %vm6585_vm2  ;;  %vm6584_vm1 = vcmp.lt.s32.totalorder %v5526_v4, 30  ;;  %v5037_v43 = vld [vmem:[%s6563_s3 + $0x10] sm:$0xf] }
  0x34   : > { %269 = vrot.lane.b32.xlu1 %v5432_v2, %s5312_s15  ;;  %285 = vrot.lane.b32.xlu0 %v5432_v2, %s5313_s16  ;;  %s5328_s8 = smov 112   ;;  %s5329_s9 = smov 111   ;;  %vm5567_vm10 = vmand %vm6579_vm3, %vm6576_vm4 }
  0x35   : > { %s5330_s10 = smov 110   ;;  %s6569_s12 = smov 98   ;;  %vm5575_vm11 = vmand %vm6583_vm0, %vm6577_vm5 }
  0x36   : > { %s5332_s13 = smov 97   ;;  %s5333_s14 = smov 96  }
  0x37   : > { %s6603_s11 = smov 95  }
  0x38   : > { %464 = vrot.lane.b32.xlu1 %v5432_v2, %s5314_s17  ;;  %462 = vrot.lane.b32.xlu0 %v5424_v1, %s5314_s17 }
  0x3c   : > { %561 = vrot.lane.b32.xlu1 %v5432_v2, %s5315_s20  ;;  %559 = vrot.lane.b32.xlu0 %v5424_v1, %s5315_s20 }
  0x40   : > { %660 = vrot.lane.b32.xlu1 %v5432_v2, %s5316_s21  ;;  %658 = vrot.lane.b32.xlu0 %v5424_v1, %s5316_s21 }
  0x44   : > { %759 = vrot.lane.b32.xlu1 %v5432_v2, %s5317_s22  ;;  %757 = vrot.lane.b32.xlu0 %v5424_v1, %s5317_s22 }
  0x48   : > { %858 = vrot.lane.b32.xlu1 %v5432_v2, %s5318_s23  ;;  %856 = vrot.lane.b32.xlu0 %v5424_v1, %s5318_s23 }
  0x4c   : > { %957 = vrot.lane.b32.xlu1 %v5432_v2, %s5319_s24  ;;  %955 = vrot.lane.b32.xlu0 %v5424_v1, %s5319_s24 }
  0x50   : > { %1054 = vrot.lane.b32.xlu1 %v5432_v2, %s5320_s25  ;;  %1052 = vrot.lane.b32.xlu0 %v5424_v1, %s5320_s25 }
  0x54   : > { %1153 = vrot.lane.b32.xlu1 %v5432_v2, %s5321_s26  ;;  %1151 = vrot.lane.b32.xlu0 %v5424_v1, %s5321_s26 }
  0x58   : > { %1252 = vrot.lane.b32.xlu1 %v5432_v2, %s5322_s27  ;;  %1250 = vrot.lane.b32.xlu0 %v5424_v1, %s5322_s27 }
  0x5c   : > { %1349 = vrot.lane.b32.xlu1 %v5432_v2, %s5323_s28  ;;  %1347 = vrot.lane.b32.xlu0 %v5424_v1, %s5323_s28 }
  0x60   : > { %1528 = vrot.lane.b32.xlu1 %v5432_v2, %s5324_s29  ;;  %1526 = vrot.lane.b32.xlu0 %v5424_v1, %s5324_s29 }
  0x64   : > { %1625 = vrot.lane.b32.xlu1 %v5432_v2, %s5325_s30  ;;  %1623 = vrot.lane.b32.xlu0 %v5424_v1, %s5325_s30 }
  0x68   : > { %1722 = vrot.lane.b32.xlu1 %v5432_v2, %s5326_s6  ;;  %1720 = vrot.lane.b32.xlu0 %v5424_v1, %s5326_s6 }
  0x6c   : > { %1821 = vrot.lane.b32.xlu1 %v5432_v2, %s5327_s7  ;;  %1819 = vrot.lane.b32.xlu0 %v5424_v1, %s5327_s7 }
  0x70   : > { %1920 = vrot.lane.b32.xlu1 %v5432_v2, %s5328_s8  ;;  %1918 = vrot.lane.b32.xlu0 %v5424_v1, %s5328_s8 }
  0x74   : > { %2017 = vrot.lane.b32.xlu1 %v5432_v2, %s5329_s9  ;;  %2015 = vrot.lane.b32.xlu0 %v5424_v1, %s5329_s9 }
  0x78   : > { %2116 = vrot.lane.b32.xlu1 %v5432_v2, %s5330_s10  ;;  %2114 = vrot.lane.b32.xlu0 %v5424_v1, %s5330_s10 }
  0x7c   : > { %2215 = vrot.lane.b32.xlu1 %v5432_v2, %s6569_s12  ;;  %2213 = vrot.lane.b32.xlu0 %v5424_v1, %s6569_s12  ;;  %s6601_s12 = smov 94  }
  0x80   : > { %2314 = vrot.lane.b32.xlu1 %v5432_v2, %s5332_s13  ;;  %2312 = vrot.lane.b32.xlu0 %v5424_v1, %s5332_s13 }
  0x84   : > { %2413 = vrot.lane.b32.xlu1 %v5432_v2, %s5333_s14  ;;  %2411 = vrot.lane.b32.xlu0 %v5424_v1, %s5333_s14 }
  0x88   : > { %2510 = vrot.lane.b32.xlu1 %v5432_v2, %s6603_s11  ;;  %2508 = vrot.lane.b32.xlu0 %v5424_v1, %s6603_s11  ;;  %s6816_s11 = smov 98  }
  0x8c   : > { %2609 = vrot.lane.b32.xlu1 %v5432_v2, %s6601_s12  ;;  %2607 = vrot.lane.b32.xlu0 %v5424_v1, %s6601_s12 }
  0xa2   : > { %v268_v10 = vpop.permute.xlu1 %267  ;;  %v284_v11 = vpop.permute.xlu0 %283 }
  0xa6   : > { %v270_v16 = vpop.permute.xlu1 %269  ;;  %v286_v17 = vpop.permute.xlu0 %285 }
  0xa7   : > { %v272_v18 = vsel %vm6571_vm7, %v268_v10, %v270_v16  ;;  %v273_v19 = vsel %vm6571_vm7, %v270_v16, %v268_v10  ;;  %v289_v20 = vsel %vm6572_vm9, %v286_v17, %v284_v11  ;;  %v288_v21 = vsel %vm6572_vm9, %v284_v11, %v286_v17  ;;  %vm5615_vm9 = vmand %vm6579_vm3, %vm6574_vm15 }
  0xa8   : > { %v281_v22 = vsel %vm5558_vm8, %v272_v18, 0.0  ;;  %v297_v23 = vsel %vm5567_vm10, %v288_v21, 0.0  ;;  %v296_v24 = vsel %vm5549_vm6, %v289_v20, 0.0  ;;  %v280_v26 = vsel %vm5575_vm11, %v273_v19, 0.0  ;;  %v773_v19 = vld [vmem:[#allocation2 + $0x28] sm:$0xff] }
  0xa9   : > { %4947 = vmatprep.subr.msk.mxu0 %vm6591_vm12, %v297_v23  ;;  %vm6578_vm7 = vcmp.lt.s32.totalorder %v5526_v4, 31  ;;  %vm6580_vm15 = vcmp.lt.s32.totalorder %v5537_v9, 14  ;;  %v6671_v16 = vmov 0 }
  0xaa   : > { %4948 = vmatpush1.msk.msra.mxu0 %vm6591_vm12, %v296_v24  ;;  %v465_v27 = vpop.permute.xlu1 %464  ;;  %v463_v28 = vpop.permute.xlu0 %462  ;;  %vm5646_vm5 = vmand %vm6579_vm3, %vm6580_vm15  ;;  %vm6590_vm15 = vcmp.lt.s32.totalorder %v5526_v4, 18 }
  0xab   : > { %4949 = vmatmul.mubr.msk.f32.vlgmr.msra.gmra.mrb[0].mxu0 %vm6582_vm13, %v299_v25  ;;  %4950 = vmatprep.subr.msk.mxu0 %vm6591_vm12, %v281_v22  ;;  %v467_v29 = vsel %vm6573_vm14, %v463_v28, %v465_v27  ;;  %v468_v31 = vsel %vm6573_vm14, %v465_v27, %v463_v28  ;;  %vm6581_vm14 = vcmp.lt.s32.totalorder %v5533_v7, 15  ;;  %v6679_v25 = vmov 0  ;;  %v872_v27 = vld [vmem:[#allocation2 + $0x30] sm:$0xff] }
  0xac   : > { %4951 = vmatpush1.msk.msra.mxu0 %vm6591_vm12, %v280_v26  ;;  %v474_v30 = vsel %vm6579_vm3, %v467_v29, 0.0  ;;  %455 = vmatprep.mubr.f32.mxu0 %v5311_v0  ;;  %v473_v37 = vsel %vm6583_vm0, %v468_v31, 0.0  ;;  %vm5636_vm4 = vmand %vm6583_vm0, %vm6581_vm14  ;;  %vm6587_vm3 = vcmp.ge.s32.totalorder %v5535_v8, 1 }
  0xad   : > { %4953 = vmatprep.subr.msk.mxu0 %vm6591_vm12, %v474_v30 }
  0xae   : > { %v562_v32 = vpop.permute.xlu1 %561  ;;  %v560_v33 = vpop.permute.xlu0 %559 }
  0xaf   : > { %v564_v35 = vsel %vm6578_vm7, %v560_v33, %v562_v32  ;;  %v565_v42 = vsel %vm6578_vm7, %v562_v32, %v560_v33  ;;  %vm6586_vm7 = vcmp.lt.s32.totalorder %v5533_v7, 14  ;;  %v6686_v32 = vmov 0 }
  0xb0   : > { %v573_v38 = vsel %vm5615_vm9, %v564_v35, 0.0  ;;  %v572_v46 = vsel %vm5636_vm4, %v565_v42, 0.0  ;;  %vm5667_vm14 = vmand %vm6583_vm0, %vm6586_vm7  ;;  %vm6661_vm0 = vcmask 31744   ;;  %vm6662_vm7 = vcmp.ge.s32.totalorder %v5533_v7, 2 }
  0xb1   : > { %v6658_v50 = vsel %vm5667_vm14, 4294967295, %v6657_v50  ;;  %v6691_v35 = vmov 0 }
  0xb2   : > { %v661_v39 = vpop.permute.xlu1 %660  ;;  %v659_v40 = vpop.permute.xlu0 %658 }
  0xb3   : > { %4952 = vmatmul.mubr.msk.f32.vlgmr.msra.gmra.mrb[0].mxu0 %vm6582_vm13, %v282_v36  ;;  %v663_v44 = vsel %vm6584_vm1, %v659_v40, %v661_v39  ;;  %v664_v51 = vsel %vm6584_vm1, %v661_v39, %v659_v40  ;;  %vm6594_vm1 = vcmp.ge.s32.totalorder %v5530_v6, 1 }
  0xb4   : > { %4954 = vmatpush1.msk.msra.mxu0 %vm6591_vm12, %v473_v37  ;;  %550 = vmatprep.mubr.f32.mxu0 %v5311_v0  ;;  %v672_v47 = vsel %vm5646_vm5, %v663_v44, 0.0  ;;  %v671_v55 = vsel %vm5667_vm14, %v664_v51, 0.0  ;;  %v969_v37 = vld [vmem:[#allocation2 + $0x38] sm:$0xff]  ;;  %v6698_v44 = vmov 0  ;;  %v2706_v51 = vld [vmem:[%s6562_s2] sm:$0xff] }
  0xb5   : > { %4956 = vmatprep.subr.msk.mxu0 %vm6591_vm12, %v573_v38 }
  0xb6   : > { %v760_v48 = vpop.permute.xlu1 %759  ;;  %v758_v49 = vpop.permute.xlu0 %757 }
  0xb7   : > { %v762_v53 = vsel %vm6590_vm15, %v758_v49, %v760_v48  ;;  %v763_v60 = vsel %vm6590_vm15, %v760_v48, %v758_v49 }
  0xba   : > { %v859_v57 = vpop.permute.xlu1 %858  ;;  %v857_v58 = vpop.permute.xlu0 %856 }
  0xbb   : > { %4955 = vmatmul.mubr.msk.f32.vlgmr.msra.gmra.mrb[0].mxu0 %vm6582_vm13, %v476_v45  ;;  %vm5677_vm13 = vmand %vm6587_vm3, %vm6585_vm2  ;;  %vm6593_vm2 = vcmp.lt.s32.totalorder %v5526_v4, 17 }
  0xbc   : > { %4957 = vmatpush1.msk.msra.mxu0 %vm6591_vm12, %v572_v46  ;;  %649 = vmatprep.mubr.f32.mxu0 %v5311_v0  ;;  %v6660_v52 = vsel %vm5677_vm13, 4294967295, %v6659_v52  ;;  %v771_v56 = vsel %vm5677_vm13, %v762_v53, 0.0  ;;  %vm5697_vm3 = vmand %vm6594_vm1, %vm6662_vm7  ;;  %vm6666_vm13 = vcmp.ge.s32.totalorder %v5535_v8, 1  ;;  %v861_v62 = vsel %vm6593_vm2, %v857_v58, %v859_v57 }
  0xbd   : > { %4959 = vmatprep.subr.msk.mxu0 %vm6591_vm12, %v672_v47  ;;  %v6664_v59 = vsel %vm5697_vm3, 4294967295, %v6663_v59  ;;  %v770_v3 = vsel %vm5697_vm3, %v763_v60, 0.0  ;;  %vm6669_vm7 = vcmask 31744   ;;  %v862_v17 = vsel %vm6593_vm2, %v859_v57, %v857_v58  ;;  %v1068_v47 = vld [vmem:[#allocation2 + $0x40] sm:$0xff]  ;;  %v1167_v58 = vld [vmem:[#allocation2 + $0x48] sm:$0xff] }
  0xbe   : > { %v958_v10 = vpop.permute.xlu1 %957  ;;  %v956_v11 = vpop.permute.xlu0 %955 }
  0xc2   : > { %v1055_v22 = vpop.permute.xlu1 %1054  ;;  %v1053_v23 = vpop.permute.xlu0 %1052 }
  0xc3   : > { %4958 = vmatmul.mubr.msk.f32.vlgmr.msra.gmra.mrb[0].mxu0 %vm6661_vm0, %v575_v54  ;;  %vm6665_vm0 = vcmp.ge.s32.totalorder %v5537_v9, 1 }
  0xc4   : > { %4960 = vmatpush1.msk.msra.mxu0 %vm6591_vm12, %v671_v55  ;;  %748 = vmatprep.mubr.f32.mxu0 %v5311_v0  ;;  %vm5707_vm14 = vmand %vm6666_vm13, %vm6665_vm0  ;;  %vm6596_vm13 = vcmp.lt.s32.totalorder %v5526_v4, 16  ;;  %vm6670_vm0 = vcmp.ge.s32.totalorder %v5533_v7, 1  ;;  %v5336_v55 = vmov 0  }
  0xc5   : > { %4962 = vmatprep.subr.msk.mxu0 %vm6591_vm12, %v771_v56  ;;  %v6668_v61 = vsel %vm5707_vm14, 4294967295, %v6667_v61  ;;  %v870_v5 = vsel %vm5707_vm14, %v861_v62, 0.0  ;;  %vm5726_vm15 = vmand %vm6594_vm1, %vm6670_vm0  ;;  %v960_v18 = vsel %vm6596_vm13, %v956_v11, %v958_v10  ;;  %vm6675_vm14 = vcmask 1043456   ;;  %5266 = vset.pattern.permute.xlu0 %v5336_v55 }
  0xc6   : > { %v6672_v16 = vsel %vm5726_vm15, 4294967295, %v6671_v16  ;;  %v869_v20 = vsel %vm5726_vm15, %v862_v17, 0.0  ;;  %vm6597_vm0 = vcmp.lt.s32.totalorder %v5526_v4, 15  ;;  %vm6676_vm2 = vmmov %vm6675_vm14  ;;  %v961_v24 = vsel %vm6596_vm13, %v958_v10, %v956_v11  ;;  %v1154_v30 = vpop.permute.xlu1 %1153  ;;  %v1152_v31 = vpop.permute.xlu0 %1151  ;;  %2709 = vperm.xlu0 %5266, %v2706_v51  }
  0xc7   : > { %vm6677_vm1 = vcmp.lt.s32.totalorder %v5537_v9, 15  ;;  %v1057_v26 = vsel %vm6597_vm0, %v1053_v23, %v1055_v22  ;;  %vm6684_vm13 = vcmp.lt.s32.totalorder %v5533_v7, 15 }
  0xca   : > { %v1253_v40 = vpop.permute.xlu1 %1252  ;;  %v1251_v42 = vpop.permute.xlu0 %1250 }
  0xcb   : > { %4961 = vmatmul.mubr.msk.f32.vlgmr.msra.gmra.mrb[0].mxu0 %vm6669_vm7, %v674_v63  ;;  %vm6673_vm7 = vcmp.ge.s32.totalorder %v5535_v8, 1 }
  0xcc   : > { %4963 = vmatpush1.msk.msra.mxu0 %vm6591_vm12, %v770_v3  ;;  %847 = vmatprep.mubr.f32.mxu0 %v5311_v0  ;;  %v967_v21 = vsel %vm6673_vm7, %v960_v18, 0.0  ;;  %vm6678_vm15 = vmmov %vm6673_vm7  ;;  %v1264_v3 = vld [vmem:[#allocation2 + $0x50] sm:$0xff]  ;;  %v1361_v18 = vld [vmem:[#allocation2 + $0x58] sm:$0xff] }
  0xcd   : > { %4965 = vmatprep.subr.msk.mxu0 %vm6591_vm12, %v870_v5  ;;  %vm6674_vm12 = vcmask 31744   ;;  %vm5749_vm7 = vmand %vm6678_vm15, %vm6677_vm1  ;;  %vm6600_vm1 = vcmp.lt.s32.totalorder %v5526_v4, 14 }
  0xce   : > { %v6680_v25 = vsel %vm5749_vm7, 4294967295, %v6679_v25  ;;  %v1066_v29 = vsel %vm5749_vm7, %v1057_v26, 0.0  ;;  %vm6683_vm15 = vmmov %vm6675_vm14  ;;  %vm6690_vm7 = vcmp.ge.s32.totalorder %v5535_v8, 1  ;;  %v1156_v36 = vsel %vm6600_vm1, %v1152_v31, %v1154_v30  ;;  %v1350_v53 = vpop.permute.xlu1 %1349  ;;  %v1348_v54 = vpop.permute.xlu0 %1347 }
  0xd2   : > { %v1529_v10 = vpop.permute.xlu1 %1528  ;;  %v1527_v11 = vpop.permute.xlu0 %1526 }
  0xd3   : > { %4964 = vmatmul.mubr.msk.f32.vlgmr.msra.gmra.mrb[0].mxu0 %vm6674_vm12, %v773_v19  ;;  %vm6681_vm12 = vcmp.ge.s32.totalorder %v5530_v6, 1 }
  0xd4   : > { %4966 = vmatpush1.msk.msra.mxu0 %vm6675_vm14, %v869_v20  ;;  %946 = vmatprep.mubr.f32.mxu0 %v5311_v0  ;;  %v966_v28 = vsel %vm6681_vm12, %v961_v24, 0.0  ;;  %vm6685_vm0 = vmmov %vm6681_vm12 }
  0xd5   : > { %4968 = vmatprep.subr.msk.mxu0 %vm6676_vm2, %v967_v21  ;;  %vm6682_vm2 = vcmask 31744   ;;  %vm5768_vm12 = vmand %vm6685_vm0, %vm6684_vm13  ;;  %vm6693_vm13 = vcmask 31744  }
  0xd6   : > { %v6687_v32 = vsel %vm5768_vm12, 4294967295, %v6686_v32  ;;  %vm6694_vm0 = vmmov %vm6683_vm15  ;;  %v1626_v20 = vpop.permute.xlu1 %1625  ;;  %v1624_v21 = vpop.permute.xlu0 %1623 }
  0xda   : > { %v1723_v26 = vpop.permute.xlu1 %1722 }
  0xdb   : > { %4967 = vmatmul.mubr.msk.f32.vlgmr.msra.gmra.mrb[0].mxu0 %vm6682_vm2, %v872_v27  ;;  %vm6688_vm2 = vcmp.lt.s32.totalorder %v5526_v4, 15  ;;  %v1721_v27 = vpop.permute.xlu0 %1720 }
  0xdc   : > { %4969 = vmatpush1.msk.msra.mxu0 %vm6675_vm14, %v966_v28  ;;  %1043 = vmatprep.mubr.f32.mxu0 %v5311_v0  ;;  %v1058_v33 = vsel %vm6688_vm2, %v1055_v22, %v1053_v23  ;;  %vm6689_vm14 = vcmp.lt.s32.totalorder %v5537_v9, 14  ;;  %vm6696_vm2 = vcmp.lt.s32.totalorder %v5533_v7, 14  ;;  %v1445_v23 = vld [vmem:[#allocation2 + $0x60] sm:$0xff] }
  0xdd   : > { %4971 = vmatprep.subr.msk.mxu0 %vm6683_vm15, %v1066_v29  ;;  %vm5778_vm3 = vmand %vm6690_vm7, %vm6689_vm14  ;;  %v1065_v38 = vsel %vm5768_vm12, %v1058_v33, 0.0  ;;  %vm6606_vm7 = vcmp.lt.s32.totalorder %v5526_v4, 2  ;;  %vm6697_vm14 = vcmp.ge.s32.totalorder %v5530_v6, 1  ;;  %v6722_v29 = vmov 0 }
  0xde   : > { %v6692_v35 = vsel %vm5778_vm3, 4294967295, %v6691_v35  ;;  %v1165_v39 = vsel %vm5778_vm3, %v1156_v36, 0.0  ;;  %vm6695_vm15 = vmmov %vm6694_vm0  ;;  %v1255_v46 = vsel %vm6606_vm7, %v1251_v42, %v1253_v40  ;;  %v1256_v56 = vsel %vm6606_vm7, %v1253_v40, %v1251_v42 }
  0xdf   : > { %vm5797_vm1 = vmand %vm6697_vm14, %vm6696_vm2  ;;  %vm6703_vm2 = vcmask 1043456   ;;  %vm6609_vm14 = vcmp.lt.s32.totalorder %v5526_v4, 1  ;;  %vm6710_vm7 = vcmp.ge.s32.totalorder %v5533_v7, 1  ;;  %v6734_v42 = vmov 0 }
  0xe0   : > { %v6699_v44 = vsel %vm5797_vm1, 4294967295, %v6698_v44  ;;  %v1352_v57 = vsel %vm6609_vm14, %v1348_v54, %v1350_v53  ;;  %v1353_v63 = vsel %vm6609_vm14, %v1350_v53, %v1348_v54  ;;  %v6739_v53 = vmov 0 }
  0xe1   : > { %v1358_v5 = vsel %vm6710_vm7, %v1353_v63, 0.0 }
  0xe3   : > { %4970 = vmatmul.mubr.msk.f32.vlgmr.msra.gmra.mrb[0].mxu0 %vm6693_vm13, %v969_v37  ;;  %vm6700_vm13 = vcmp.lt.s32.totalorder %v5526_v4, 14  ;;  %v1822_v37 = vpop.permute.xlu1 %1821 }
  0xe4   : > { %4972 = vmatpush1.msk.msra.mxu0 %vm6694_vm0, %v1065_v38  ;;  %1142 = vmatprep.mubr.f32.mxu0 %v5311_v0  ;;  %v1157_v45 = vsel %vm6700_vm13, %v1154_v30, %v1152_v31  ;;  %vm6701_vm0 = vcmp.ge.s32.totalorder %v5537_v9, 2  ;;  %vm6704_vm13 = vmmov %vm6703_vm2  ;;  %v1540_v31 = vld [vmem:[#allocation2 + $0x68] sm:$0xff]  ;;  %v1820_v38 = vpop.permute.xlu0 %1819 }
  0xe5   : > { %4974 = vmatprep.subr.msk.mxu0 %vm6695_vm15, %v1165_v39  ;;  %v1164_v48 = vsel %vm5797_vm1, %v1157_v45, 0.0  ;;  %v1262_v49 = vsel %vm6701_vm0, %v1255_v46, 0.0  ;;  %vm6702_vm15 = vcmask 31744   ;;  %vm6705_vm0 = vcmp.ge.s32.totalorder %v5533_v7, 2  ;;  %vm6708_vm1 = vmmov %vm6704_vm13  ;;  %v1637_v46 = vld [vmem:[#allocation2 + $0x70] sm:$0xff] }
  0xe6   : > { %v1261_v60 = vsel %vm6705_vm0, %v1256_v56, 0.0  ;;  %vm6712_vm0 = vmmov %vm6708_vm1  ;;  %v6729_v39 = vmov 0  ;;  %v1736_v56 = vld [vmem:[#allocation2 + $0x78] sm:$0xff] }
  0xe8   : > { %v1919_v51 = vpop.permute.xlu0 %1918 }
  0xeb   : > { %4973 = vmatmul.mubr.msk.f32.vlgmr.msra.gmra.mrb[0].mxu0 %vm6702_vm15, %v1068_v47  ;;  %vm6706_vm15 = vcmp.ge.s32.totalorder %v5537_v9, 1 }
  0xec   : > { %4975 = vmatpush1.msk.msra.mxu0 %vm6703_vm2, %v1164_v48  ;;  %1241 = vmatprep.mubr.f32.mxu0 %v5311_v0  ;;  %v1359_v62 = vsel %vm6706_vm15, %v1352_v57, 0.0  ;;  %vm6707_vm2 = vcmask 31744   ;;  %vm6713_vm15 = vmmov %vm6712_vm0 }
  0xed   : > { %4977 = vmatprep.subr.msk.mxu0 %vm6704_vm13, %v1262_v49  ;;  %vm6709_vm13 = vmmov %vm6708_vm1  ;;  %v1921_v49 = vpop.permute.xlu1 %1920 }
  0xee   : > { %vm6711_vm3 = vmmov %vm6707_vm2 }
  0xef   : > { %vm6715_vm7 = vmmov %vm6711_vm3 }
  0xf3   : > { %4976 = vmatmul.mubr.msk.f32.vlgmr.msra.gmra.mrb[0].mxu0 %vm6707_vm2, %v1167_v58  ;;  %vm6714_vm2 = vcmp.lt.s32.totalorder %v5537_v9, 15 }
  0xf4   : > { %4978 = vmatpush1.msk.msra.mxu0 %vm6708_vm1, %v1261_v60  ;;  %1338 = vmatprep.mubr.f32.mxu0 %v5311_v0  ;;  %vm6608_vm1 = vcmp.lt.s32.totalorder %v5526_v4, 127  ;;  %v2018_v60 = vpop.permute.xlu1 %2017 }
  0xf5   : > { %4980 = vmatprep.subr.msk.mxu0 %vm6709_vm13, %v1359_v62  ;;  %v1532_v17 = vsel %vm6608_vm1, %v1529_v10, %v1527_v11  ;;  %vm6610_vm13 = vcmp.lt.s32.totalorder %v5526_v4, 126  ;;  %v2016_v62 = vpop.permute.xlu0 %2015 }
  0xf6   : > { %v1538_v19 = vsel %vm6714_vm2, %v1532_v17, 0.0  ;;  %v1629_v22 = vsel %vm6610_vm13, %v1626_v20, %v1624_v21  ;;  %vm6718_vm2 = vcmp.lt.s32.totalorder %v5537_v9, 14  ;;  %v1628_v28 = vsel %vm6610_vm13, %v1624_v21, %v1626_v20 }
  0xf7   : > { %vm6726_vm13 = vcmask 1043456   ;;  %v6754_v20 = vmov 0 }
  0xfb   : > { %4979 = vmatmul.mubr.msk.f32.vlgmr.msra.gmra.mrb[0].mxu0 %vm6711_vm3, %v1264_v3  ;;  %vm6716_vm3 = vmmov %vm6712_vm0  ;;  %v6748_v3 = vmov 0 }
  0xfc   : > { %4981 = vmatpush1.msk.msra.mxu0 %vm6712_vm0, %v1358_v5  ;;  %1435 = vmatprep.mubr.f32.mxu0 %v5311_v0 }
  0xfd   : > { %4983 = vmatprep.subr.msk.mxu0 %vm6713_vm15, %v5432_v2  ;;  %v1531_v2 = vsel %vm6608_vm1, %v1527_v11, %v1529_v10  ;;  %vm6717_vm15 = vcmp.lt.s32.totalorder %v5533_v7, 15  ;;  %vm6612_vm1 = vcmp.lt.s32.totalorder %v5526_v4, 114  ;;  %v1835_v10 = vld [vmem:[#allocation2 + $0x80] sm:$0xff] }
  0xfe   : > { %v1537_v24 = vsel %vm6717_vm15, %v1531_v2, 0.0  ;;  %vm6721_vm15 = vcmp.ge.s32.totalorder %v5537_v9, 2  ;;  %v1726_v30 = vsel %vm6612_vm1, %v1723_v26, %v1721_v27  ;;  %vm6728_vm1 = vcmp.ge.s32.totalorder %v5533_v7, 2 }
  0xff   : > { %v6759_v2 = vmov 0 }
 0x103   : > { %4982 = vmatmul.mubr.msk.f32.vlgmr.msra.gmra.mrb[0].mxu0 %vm6715_vm7, %v1361_v18  ;;  %v2117_v18 = vpop.permute.xlu1 %2116 }
 0x104   : > { %4984 = vmatpush1.msk.msra.mxu0 %vm6716_vm3, %v5424_v1  ;;  %1517 = vmatprep.mubr.f32.mxu0 %v5311_v0  ;;  %v1635_v1 = vsel %vm6718_vm2, %v1629_v22, 0.0  ;;  %vm6719_vm3 = vmmov %vm6712_vm0 }
 0x105   : > { %4986 = vmatprep.subr.msk.mxu0 %vm6712_vm0, %v1538_v19  ;;  %vm6611_vm0 = vcmp.lt.s32.totalorder %v5535_v8, 15  ;;  %vm6720_vm14 = vmmov %vm6719_vm3  ;;  %v2115_v19 = vpop.permute.xlu0 %2114 }
 0x106   : > { %vm5869_vm2 = vmand %vm6611_vm0, %vm6721_vm15  ;;  %vm6615_vm15 = vcmp.lt.s32.totalorder %v5526_v4, 113 }
 0x107   : > { %v6723_v29 = vsel %vm5869_vm2, 4294967295, %v6722_v29  ;;  %v1734_v36 = vsel %vm5869_vm2, %v1726_v30, 0.0  ;;  %vm6727_vm0 = vmmov %vm6726_vm13  ;;  %vm6733_vm2 = vcmp.lt.s32.totalorder %v5535_v8, 15  ;;  %v1825_v45 = vsel %vm6615_vm15, %v1822_v37, %v1820_v38 }
 0x10b   : > { %4985 = vmatmul.mubr.msk.f32.vlgmr.msra.gmra.mrb[0].mxu0 %vm6715_vm7, %v1445_v23  ;;  %vm6724_vm7 = vcmp.lt.s32.totalorder %v5533_v7, 14  ;;  %v1932_v23 = vld [vmem:[#allocation2 + $0x88] sm:$0xff] }
 0x10c   : > { %4987 = vmatpush1.msk.msra.mxu0 %vm6719_vm3, %v1537_v24  ;;  %1614 = vmatprep.mubr.f32.mxu0 %v5311_v0  ;;  %v1634_v33 = vsel %vm6724_vm7, %v1628_v28, 0.0  ;;  %vm6617_vm3 = vcmp.lt.s32.totalorder %v5530_v6, 15  ;;  %v6766_v28 = vmov 0 }
 0x10d   : > { %4989 = vmatprep.subr.msk.mxu0 %vm6720_vm14, %v1635_v1  ;;  %vm6725_vm14 = vcmask 31744   ;;  %vm5889_vm7 = vmand %vm6617_vm3, %vm6728_vm1  ;;  %vm6736_vm1 = vcmask 31744  }
 0x10e   : > { %v6730_v39 = vsel %vm5889_vm7, 4294967295, %v6729_v39 }
 0x113   : > { %4988 = vmatmul.mubr.msk.f32.vlgmr.msra.gmra.mrb[0].mxu0 %vm6725_vm14, %v1540_v31  ;;  %vm6731_vm14 = vcmp.lt.s32.totalorder %v5526_v4, 114  ;;  %v6770_v31 = vmov 0 }
 0x114   : > { %4990 = vmatpush1.msk.msra.mxu0 %vm6726_vm13, %v1634_v33  ;;  %1711 = vmatprep.mubr.f32.mxu0 %v5311_v0  ;;  %v1725_v40 = vsel %vm6731_vm14, %v1721_v27, %v1723_v26  ;;  %vm6732_vm13 = vcmp.ge.s32.totalorder %v5537_v9, 1  ;;  %vm6737_vm14 = vmmov %vm6727_vm0  ;;  %v2216_v26 = vpop.permute.xlu1 %2215  ;;  %v2214_v27 = vpop.permute.xlu0 %2213 }
 0x115   : > { %4992 = vmatprep.subr.msk.mxu0 %vm6727_vm0, %v1734_v36  ;;  %vm5899_vm12 = vmand %vm6733_vm2, %vm6732_vm13  ;;  %v1733_v47 = vsel %vm5889_vm7, %v1725_v40, 0.0  ;;  %vm6619_vm2 = vcmp.lt.s32.totalorder %v5526_v4, 112  ;;  %vm6738_vm13 = vcmp.ge.s32.totalorder %v5533_v7, 1  ;;  %v2031_v36 = vld [vmem:[#allocation2 + $0x90] sm:$0xff] }
 0x116   : > { %v6735_v42 = vsel %vm5899_vm12, 4294967295, %v6734_v42  ;;  %v1833_v48 = vsel %vm5899_vm12, %v1825_v45, 0.0  ;;  %vm5918_vm15 = vmand %vm6617_vm3, %vm6738_vm13  ;;  %v1924_v55 = vsel %vm6619_vm2, %v1921_v49, %v1919_v51  ;;  %vm6744_vm12 = vcmask 1043456  }
 0x117   : > { %v6740_v53 = vsel %vm5918_vm15, 4294967295, %v6739_v53  ;;  %vm6620_vm13 = vcmp.lt.s32.totalorder %v5526_v4, 111  ;;  %v1923_v63 = vsel %vm6619_vm2, %v1919_v51, %v1921_v49  ;;  %vm6746_vm3 = vcmp.lt.s32.totalorder %v5537_v9, 15  ;;  %v2130_v51 = vld [vmem:[#allocation2 + $0x98] sm:$0xff] }
 0x118   : > { %v2021_v5 = vsel %vm6620_vm13, %v2018_v60, %v2016_v62  ;;  %vm6752_vm2 = vcmp.lt.s32.totalorder %v5533_v7, 15  ;;  %v2315_v40 = vpop.permute.xlu1 %2314  ;;  %v2313_v45 = vpop.permute.xlu0 %2312 }
 0x11b   : > { %4991 = vmatmul.mubr.msk.f32.vlgmr.msra.gmra.mrb[0].mxu0 %vm6736_vm1, %v1637_v46  ;;  %vm6741_vm1 = vcmp.lt.s32.totalorder %v5526_v4, 113  ;;  %v6776_v46 = vmov 0 }
 0x11c   : > { %4993 = vmatpush1.msk.msra.mxu0 %vm6727_vm0, %v1733_v47  ;;  %1810 = vmatprep.mubr.f32.mxu0 %v5311_v0  ;;  %v1824_v54 = vsel %vm6741_vm1, %v1820_v38, %v1822_v37  ;;  %vm6742_vm0 = vcmp.lt.s32.totalorder %v5535_v8, 15  ;;  %vm6745_vm1 = vmmov %vm6744_vm12 }
 0x11d   : > { %4995 = vmatprep.subr.msk.mxu0 %vm6737_vm14, %v1833_v48  ;;  %v1832_v57 = vsel %vm5918_vm15, %v1824_v54, 0.0  ;;  %v1930_v58 = vsel %vm6742_vm0, %v1924_v55, 0.0  ;;  %vm6743_vm14 = vcmask 31744   ;;  %vm6747_vm15 = vmmov %vm6742_vm0  ;;  %v6781_v48 = vmov 0 }
 0x11e   : > { %vm5941_vm0 = vmand %vm6747_vm15, %vm6746_vm3  ;;  %vm6623_vm3 = vcmp.lt.s32.totalorder %v5526_v4, 110 }
 0x11f   : > { %v6749_v3 = vsel %vm5941_vm0, 4294967295, %v6748_v3  ;;  %v2029_v17 = vsel %vm5941_vm0, %v2021_v5, 0.0  ;;  %vm6751_vm15 = vmmov %vm6745_vm1  ;;  %vm6758_vm0 = vcmp.lt.s32.totalorder %v5535_v8, 15  ;;  %v2120_v22 = vsel %vm6623_vm3, %v2117_v18, %v2115_v19 }
 0x120   : > { %vm6765_vm3 = vcmp.lt.s32.totalorder %v5530_v6, 15 }
 0x123   : > { %4994 = vmatmul.mubr.msk.f32.vlgmr.msra.gmra.mrb[0].mxu0 %vm6743_vm14, %v1736_v56  ;;  %v2414_v56 = vpop.permute.xlu1 %2413 }
 0x124   : > { %4996 = vmatpush1.msk.msra.mxu0 %vm6744_vm12, %v1832_v57  ;;  %1909 = vmatprep.mubr.f32.mxu0 %v5311_v0  ;;  %vm6750_vm12 = vcmp.lt.s32.totalorder %v5530_v6, 15  ;;  %v2412_v57 = vpop.permute.xlu0 %2411 }
 0x125   : > { %4998 = vmatprep.subr.msk.mxu0 %vm6745_vm1, %v1930_v58  ;;  %v1929_v11 = vsel %vm6750_vm12, %v1923_v63, 0.0  ;;  %vm6753_vm13 = vmmov %vm6750_vm12  ;;  %v6786_v58 = vmov 0  ;;  %v2229_v63 = vld [vmem:[#allocation2 + $0xa0] sm:$0xff] }
 0x126   : > { %vm5960_vm12 = vmand %vm6753_vm13, %vm6752_vm2  ;;  %vm6761_vm2 = vcmask 31744  }
 0x127   : > { %v6755_v20 = vsel %vm5960_vm12, 4294967295, %v6754_v20  ;;  %vm6762_vm13 = vmmov %vm6751_vm15 }
 0x12b   : > { %4997 = vmatmul.mubr.msk.f32.vlgmr.msra.gmra.mrb[0].mxu0 %vm6743_vm14, %v1835_v10  ;;  %vm6756_vm14 = vcmp.lt.s32.totalorder %v5526_v4, 111 }
 0x12c   : > { %4999 = vmatpush1.msk.msra.mxu0 %vm6745_vm1, %v1929_v11  ;;  %2006 = vmatprep.mubr.f32.mxu0 %v5311_v0  ;;  %v2020_v21 = vsel %vm6756_vm14, %v2016_v62, %v2018_v60  ;;  %vm6757_vm1 = vcmp.lt.s32.totalorder %v5537_v9, 14  ;;  %vm6763_vm14 = vmmov %vm6762_vm13  ;;  %v2511_v11 = vpop.permute.xlu1 %2510 }
 0x12d   : > { %5001 = vmatprep.subr.msk.mxu0 %vm6751_vm15, %v2029_v17  ;;  %vm5970_vm7 = vmand %vm6758_vm0, %vm6757_vm1  ;;  %v2028_v24 = vsel %vm5960_vm12, %v2020_v21, 0.0  ;;  %vm6626_vm0 = vcmp.lt.s32.totalorder %v5535_v8, 14  ;;  %vm6627_vm15 = vcmp.lt.s32.totalorder %v5526_v4, 98  ;;  %vm6764_vm1 = vcmp.lt.s32.totalorder %v5533_v7, 14  ;;  %v2509_v17 = vpop.permute.xlu0 %2508 }
 0x12e   : > { %v6760_v2 = vsel %vm5970_vm7, 4294967295, %v6759_v2  ;;  %v2128_v1 = vsel %vm5970_vm7, %v2120_v22, 0.0  ;;  %vm5990_vm12 = vmand %vm6765_vm3, %vm6764_vm1  ;;  %v2219_v33 = vsel %vm6627_vm15, %v2216_v26, %v2214_v27  ;;  %vm6772_vm3 = vcmask 31744   ;;  %v2328_v22 = vld [vmem:[#allocation2 + $0xa8] sm:$0xff] }
 0x12f   : > { %v6767_v28 = vsel %vm5990_vm12, 4294967295, %v6766_v28  ;;  %vm6773_vm1 = vcmask 1043456  }
 0x133   : > { %5000 = vmatmul.mubr.msk.f32.vlgmr.msra.gmra.mrb[0].mxu0 %vm6761_vm2, %v1932_v23  ;;  %vm6768_vm2 = vcmp.lt.s32.totalorder %v5526_v4, 110 }
 0x134   : > { %5002 = vmatpush1.msk.msra.mxu0 %vm6762_vm13, %v2028_v24  ;;  %2105 = vmatprep.mubr.f32.mxu0 %v5311_v0  ;;  %v2119_v30 = vsel %vm6768_vm2, %v2115_v19, %v2117_v18  ;;  %vm6769_vm13 = vcmp.ge.s32.totalorder %v5537_v9, 2  ;;  %vm6630_vm2 = vcmp.lt.s32.totalorder %v5526_v4, 97  ;;  %v6795_v19 = vmov 0 }
 0x135   : > { %5004 = vmatprep.subr.msk.mxu0 %vm6763_vm14, %v2128_v1  ;;  %vm6000_vm7 = vmand %vm6626_vm0, %vm6769_vm13  ;;  %v2127_v37 = vsel %vm5990_vm12, %v2119_v30, 0.0  ;;  %vm6632_vm14 = vcmp.lt.s32.totalorder %v5530_v6, 14  ;;  %vm6775_vm0 = vcmp.ge.s32.totalorder %v5533_v7, 2  ;;  %v2318_v49 = vsel %vm6630_vm2, %v2315_v40, %v2313_v45  ;;  %v2610_v1 = vpop.permute.xlu1 %2609 }
 0x136   : > { %v6771_v31 = vsel %vm6000_vm7, 4294967295, %v6770_v31  ;;  %v2227_v38 = vsel %vm6000_vm7, %v2219_v33, 0.0  ;;  %vm6774_vm13 = vmmov %vm6773_vm1  ;;  %vm6780_vm7 = vcmp.lt.s32.totalorder %v5535_v8, 14 }
 0x137   : > { %vm6020_vm15 = vmand %vm6632_vm14, %vm6775_vm0  ;;  %vm6783_vm0 = vcmask 31744  }
 0x138   : > { %v6777_v46 = vsel %vm6020_vm15, 4294967295, %v6776_v46 }
 0x13b   : > { %5003 = vmatmul.mubr.msk.f32.vlgmr.msra.gmra.mrb[0].mxu0 %vm6772_vm3, %v2031_v36  ;;  %vm6778_vm3 = vcmp.lt.s32.totalorder %v5526_v4, 98 }
 0x13c   : > { %5005 = vmatpush1.msk.msra.mxu0 %vm6773_vm1, %v2127_v37  ;;  %2204 = vmatprep.mubr.f32.mxu0 %v5311_v0  ;;  %v2218_v47 = vsel %vm6778_vm3, %v2214_v27, %v2216_v26  ;;  %vm6779_vm1 = vcmp.ge.s32.totalorder %v5537_v9, 1  ;;  %vm6784_vm3 = vmmov %vm6774_vm13  ;;  %v2608_v26 = vpop.permute.xlu0 %2607  ;;  %v2425_v37 = vld [vmem:[#allocation2 + $0xb0] sm:$0xff]  ;;  %v5115_v27 = vld [vmem:[%s6563_s3 + $0x60] sm:$0xf] }
 0x13d   : > { %5007 = vmatprep.subr.msk.mxu0 %vm6774_vm13, %v2227_v38  ;;  %vm6030_vm12 = vmand %vm6780_vm7, %vm6779_vm1  ;;  %v2226_v54 = vsel %vm6020_vm15, %v2218_v47, 0.0  ;;  %vm6634_vm7 = vcmp.lt.s32.totalorder %v5526_v4, 96  ;;  %vm6785_vm1 = vcmp.ge.s32.totalorder %v5533_v7, 1 }
 0x13e   : > { %v6782_v48 = vsel %vm6030_vm12, 4294967295, %v6781_v48  ;;  %v2326_v55 = vsel %vm6030_vm12, %v2318_v49, 0.0  ;;  %vm6049_vm2 = vmand %vm6632_vm14, %vm6785_vm1  ;;  %v2417_v62 = vsel %vm6634_vm7, %v2414_v56, %v2412_v57  ;;  %vm6791_vm12 = vcmask 1043456   ;;  %v2524_v49 = vld [vmem:[#allocation2 + $0xb8] sm:$0xff] }
 0x13f   : > { %v6787_v58 = vsel %vm6049_vm2, 4294967295, %v6786_v58  ;;  %vm6635_vm1 = vcmp.lt.s32.totalorder %v5526_v4, 95  ;;  %v2416_v18 = vsel %vm6634_vm7, %v2412_v57, %v2414_v56  ;;  %vm6793_vm14 = vcmp.lt.s32.totalorder %v5537_v9, 15 }
 0x140   : > { %v2514_v21 = vsel %vm6635_vm1, %v2511_v11, %v2509_v17  ;;  %vm6799_vm7 = vcmp.lt.s32.totalorder %v5533_v7, 15 }
 0x143   : > { %5006 = vmatmul.mubr.msk.f32.vlgmr.msra.gmra.mrb[0].mxu0 %vm6783_vm0, %v2130_v51  ;;  %vm6788_vm0 = vcmp.lt.s32.totalorder %v5526_v4, 97 }
 0x144   : > { %5008 = vmatpush1.msk.msra.mxu0 %vm6774_vm13, %v2226_v54  ;;  %2303 = vmatprep.mubr.f32.mxu0 %v5311_v0  ;;  %v2317_v60 = vsel %vm6788_vm0, %v2313_v45, %v2315_v40  ;;  %vm6789_vm13 = vcmp.lt.s32.totalorder %v5535_v8, 14  ;;  %vm6792_vm0 = vmmov %vm6791_vm12  ;;  %v2623_v54 = vld [vmem:[#allocation2 + $0xc0] sm:$0xff] }
 0x145   : > { %5010 = vmatprep.subr.msk.mxu0 %vm6784_vm3, %v2326_v55  ;;  %v2325_v5 = vsel %vm6049_vm2, %v2317_v60, 0.0  ;;  %v2423_v10 = vsel %vm6789_vm13, %v2417_v62, 0.0  ;;  %vm6790_vm3 = vcmask 31744   ;;  %vm6794_vm2 = vmmov %vm6789_vm13  ;;  %v2710_v55 = vpop.permute.xlu0 %2709 }
 0x146   : > { %vm6072_vm13 = vmand %vm6794_vm2, %vm6793_vm14  ;;  %vm2611_vm14 = vcmp.lt.s32.totalorder %v5526_v4, 94 }
 0x147   : > { %v6796_v19 = vsel %vm6072_vm13, 4294967295, %v6795_v19  ;;  %v2522_v24 = vsel %vm6072_vm13, %v2514_v21, 0.0  ;;  %vm6798_vm2 = vmmov %vm6792_vm0  ;;  %vm6805_vm13 = vcmp.lt.s32.totalorder %v5535_v8, 14  ;;  %v2613_v36 = vsel %vm2611_vm14, %v2610_v1, %v2608_v26 }
 0x148   : > { %v2612_v47 = vsel %vm2611_vm14, %v2608_v26, %v2610_v1 }
 0x14b   : > { %5009 = vmatmul.mubr.msk.f32.vlgmr.msra.gmra.mrb[0].mxu0 %vm6790_vm3, %v2229_v63 }
 0x14c   : > { %5011 = vmatpush1.msk.msra.mxu0 %vm6791_vm12, %v2325_v5  ;;  %2402 = vmatprep.mubr.f32.mxu0 %v5311_v0  ;;  %vm6797_vm12 = vcmp.lt.s32.totalorder %v5530_v6, 14 }
 0x14d   : > { %5013 = vmatprep.subr.msk.mxu0 %vm6792_vm0, %v2423_v10  ;;  %v2422_v23 = vsel %vm6797_vm12, %v2416_v18, 0.0  ;;  %vm6800_vm1 = vmmov %vm6797_vm12  ;;  %v4854_v10 = vld [vmem:[%s6564_s4] sm:$0xf] }
 0x14e   : > { %vm6091_vm12 = vmand %vm6800_vm1, %vm6799_vm7  ;;  %vm6808_vm7 = vcmask 31744  }
 0x14f   : > { %vm6809_vm1 = vmmov %vm6798_vm2 }
 0x153   : > { %5012 = vmatmul.mubr.msk.f32.vlgmr.msra.gmra.mrb[0].mxu0 %vm6790_vm3, %v2328_v22  ;;  %vm6803_vm3 = vcmp.lt.s32.totalorder %v5526_v4, 95 }
 0x154   : > { %5014 = vmatpush1.msk.msra.mxu0 %vm6792_vm0, %v2422_v23  ;;  %2499 = vmatprep.mubr.f32.mxu0 %v5311_v0  ;;  %v2513_v30 = vsel %vm6803_vm3, %v2509_v17, %v2511_v11  ;;  %vm6804_vm0 = vcmp.lt.s32.totalorder %v5537_v9, 14  ;;  %vm6812_vm3 = vcmp.lt.s32.totalorder %v5530_v6, 14  ;;  %v5022_v23 = vld [vmem:[%s6563_s3 + $0x4] sm:$0xf] }
 0x155   : > { %5016 = vmatprep.subr.msk.mxu0 %vm6798_vm2, %v2522_v24  ;;  %vm6101_vm15 = vmand %vm6805_vm13, %vm6804_vm0  ;;  %v2521_v38 = vsel %vm6091_vm12, %v2513_v30, 0.0  ;;  %vm6811_vm2 = vcmp.lt.s32.totalorder %v5533_v7, 14 }
 0x156   : > { %v2621_v40 = vsel %vm6101_vm15, %v2613_v36, 0.0  ;;  %vm6810_vm13 = vmmov %vm6809_vm1  ;;  %v2724_v36 = vld [vmem:[%s6563_s3] sm:$0xf] }
 0x157   : > { %vm6119_vm0 = vmand %vm6812_vm3, %vm6811_vm2  ;;  %vm6819_vm2 = vcmp.lt.s32.totalorder %v5526_v4, 33 }
 0x158   : > { %v2620_v51 = vsel %vm6119_vm0, %v2612_v47, 0.0  ;;  %vm6820_vm3 = vmmov %vm6819_vm2 }
 0x15b   : > { %5015 = vmatmul.mubr.msk.f32.vlgmr.msra.gmra.mrb[0].mxu0 %vm6808_vm7, %v2425_v37 }
 0x15c   : > { %5017 = vmatpush1.msk.msra.mxu0 %vm6809_vm1, %v2521_v38  ;;  %2598 = vmatprep.mubr.f32.mxu0 %v5311_v0 }
 0x15d   : > { %5019 = vmatprep.subr.msk.mxu0 %vm6810_vm13, %v2621_v40  ;;  %vm6815_vm13 = vmmov %vm6808_vm7  ;;  %v5029_v40 = vld [vmem:[%s6563_s3 + $0x8] sm:$0xf] }
 0x163   : > { %5018 = vmatmul.mubr.msk.f32.vlgmr.msra.gmra.mrb[0].mxu0 %vm6808_vm7, %v2524_v49  ;;  %vm2735_vm7 = vcmask 64512  }
 0x164   : > { %5020 = vmatpush1.msk.msra.mxu0 %vm6809_vm1, %v2620_v51  ;;  %2697 = vmatprep.mubr.f32.mxu0 %v5311_v0  ;;  %vm6821_vm1 = vcmp.lt.s32.totalorder %v5526_v4, 34 }
 0x16b   : > { %5021 = vmatmul.mubr.msk.f32.vlgmr.msra.gmra.mrb[0].mxu0 %vm6815_vm13, %v2623_v54  ;;  %vm6822_vm13 = vmmov %vm6821_vm1 }
 0x23e   : > { %v2699_v56 = vpop.f32.mrb[0].mxu0 }
 0x23f   : > { %v2712_v57 = vadd.f32 %v2710_v55, %v2699_v56  ;;  %v2701_v60 = vpop.f32.mrb[1].mxu0 }
 0x240   : > { %v2713_v63 = vadd.f32 %v2710_v55, %v2701_v60 }
 0x241   : > { %v6131_v62 = vmax.f32 %v2712_v57, 0.0 }
 0x242   : > { %v6137_v5 = vmax.f32 %v2713_v63, 0.0 }
 0x243   : > { %2716 = vrot.lane.b32.xlu0 %v6131_v62, %s5312_s15  ;;  %2725 = vrot.lane.b32.xlu1 %v6131_v62, %s5313_s16 }
 0x247   : > { %2884 = vrot.lane.b32.xlu0 %v6131_v62, %s5314_s17  ;;  %2727 = vrot.lane.b32.xlu1 %v6137_v5, %s5313_s16  ;;  %s6818_s16 = smov 94  }
 0x24b   : > { %2970 = vrot.lane.b32.xlu0 %v6131_v62, %s5315_s20  ;;  %2718 = vrot.lane.b32.xlu1 %v6137_v5, %s5312_s15  ;;  %s6817_s15 = smov 95  }
 0x24f   : > { %3056 = vrot.lane.b32.xlu0 %v6131_v62, %s5316_s21  ;;  %2886 = vrot.lane.b32.xlu1 %v6137_v5, %s5314_s17 }
 0x253   : > { %3142 = vrot.lane.b32.xlu0 %v6131_v62, %s5317_s22  ;;  %2972 = vrot.lane.b32.xlu1 %v6137_v5, %s5315_s20 }
 0x257   : > { %3228 = vrot.lane.b32.xlu0 %v6131_v62, %s5318_s23  ;;  %3058 = vrot.lane.b32.xlu1 %v6137_v5, %s5316_s21 }
 0x25b   : > { %3314 = vrot.lane.b32.xlu0 %v6131_v62, %s5319_s24  ;;  %3144 = vrot.lane.b32.xlu1 %v6137_v5, %s5317_s22 }
 0x25f   : > { %3400 = vrot.lane.b32.xlu0 %v6131_v62, %s5320_s25  ;;  %3230 = vrot.lane.b32.xlu1 %v6137_v5, %s5318_s23 }
 0x263   : > { %3486 = vrot.lane.b32.xlu0 %v6131_v62, %s5321_s26  ;;  %3316 = vrot.lane.b32.xlu1 %v6137_v5, %s5319_s24 }
 0x267   : > { %3572 = vrot.lane.b32.xlu0 %v6131_v62, %s5322_s27  ;;  %3402 = vrot.lane.b32.xlu1 %v6137_v5, %s5320_s25  ;;  %s6903_s25 = sshll.u32 %s6905_s19, 3 }
 0x26b   : > { %3658 = vrot.lane.b32.xlu0 %v6131_v62, %s5323_s28  ;;  %3488 = vrot.lane.b32.xlu1 %v6137_v5, %s5321_s26 }
 0x26f   : > { %3822 = vrot.lane.b32.xlu0 %v6131_v62, %s5324_s29  ;;  %3574 = vrot.lane.b32.xlu1 %v6137_v5, %s5322_s27 }
 0x273   : > { %3908 = vrot.lane.b32.xlu0 %v6131_v62, %s5325_s30  ;;  %3660 = vrot.lane.b32.xlu1 %v6137_v5, %s5323_s28  ;;  %s239_s28 = scalar_lea.vmem %s6565_s5, %s6903_s25 }
 0x277   : > { %3994 = vrot.lane.b32.xlu0 %v6131_v62, %s5326_s6  ;;  %3824 = vrot.lane.b32.xlu1 %v6137_v5, %s5324_s29 }
 0x27b   : > { %4080 = vrot.lane.b32.xlu0 %v6131_v62, %s5327_s7  ;;  %3910 = vrot.lane.b32.xlu1 %v6137_v5, %s5325_s30 }
 0x27f   : > { %4166 = vrot.lane.b32.xlu0 %v6131_v62, %s5328_s8  ;;  %3996 = vrot.lane.b32.xlu1 %v6137_v5, %s5326_s6 }
 0x283   : > { %4252 = vrot.lane.b32.xlu0 %v6131_v62, %s5329_s9  ;;  %4082 = vrot.lane.b32.xlu1 %v6137_v5, %s5327_s7 }
 0x287   : > { %4338 = vrot.lane.b32.xlu0 %v6131_v62, %s5330_s10  ;;  %4168 = vrot.lane.b32.xlu1 %v6137_v5, %s5328_s8 }
 0x28b   : > { %4424 = vrot.lane.b32.xlu0 %v6131_v62, %s6816_s11  ;;  %4254 = vrot.lane.b32.xlu1 %v6137_v5, %s5329_s9 }
 0x28f   : > { %4510 = vrot.lane.b32.xlu0 %v6131_v62, %s5332_s13  ;;  %4340 = vrot.lane.b32.xlu1 %v6137_v5, %s5330_s10 }
 0x293   : > { %4596 = vrot.lane.b32.xlu0 %v6131_v62, %s5333_s14  ;;  %4426 = vrot.lane.b32.xlu1 %v6137_v5, %s6816_s11 }
 0x297   : > { %4682 = vrot.lane.b32.xlu0 %v6131_v62, %s6817_s15  ;;  %4512 = vrot.lane.b32.xlu1 %v6137_v5, %s5332_s13 }
 0x29b   : > { %4768 = vrot.lane.b32.xlu0 %v6131_v62, %s6818_s16  ;;  %4598 = vrot.lane.b32.xlu1 %v6137_v5, %s5333_s14 }
 0x29f   : > { %4857 = vperm.xlu0 %5266, %v4854_v10   ;;  %4684 = vrot.lane.b32.xlu1 %v6137_v5, %s6817_s15 }
 0x2a3   : > { %4770 = vrot.lane.b32.xlu1 %v6137_v5, %s6818_s16 }
 0x2b5   : > { %v2726_v11 = vpop.permute.xlu1 %2725  ;;  %v2717_v17 = vpop.permute.xlu0 %2716 }
 0x2b9   : > { %v2728_v18 = vpop.permute.xlu1 %2727  ;;  %v2885_v30 = vpop.permute.xlu0 %2884 }
 0x2ba   : > { %v2729_v21 = vsel %vm6819_vm2, %v2726_v11, %v2728_v18  ;;  %v2730_v22 = vsel %vm6820_vm3, %v2728_v18, %v2726_v11 }
 0x2bb   : > { %5023 = vmatprep.subr.msk.mxu1 %vm5567_vm10, %v2729_v21  ;;  %vm6824_vm10 = vcmp.ge.s32.totalorder %v5535_v8, 2 }
 0x2bc   : > { %5024 = vmatpush1.msk.msra.mxu1 %vm5549_vm6, %v2730_v22  ;;  %vm6823_vm6 = vcmp.lt.s32.totalorder %v5526_v4, 32 }
 0x2bd   : > { %5025 = vmatmul.mubr.msk.f32.vlgmr.msra.gmra.mrb[0].mxu1 %vm2735_vm7, %v5022_v23  ;;  %v2719_v24 = vpop.permute.xlu1 %2718  ;;  %v2971_v37 = vpop.permute.xlu0 %2970  ;;  %vm6825_vm2 = vmmov %vm6823_vm6 }
 0x2be   : > { %v2720_v1 = vsel %vm6821_vm1, %v2717_v17, %v2719_v24  ;;  %v2721_v26 = vsel %vm6822_vm13, %v2719_v24, %v2717_v17  ;;  %2877 = vmatprep.mubr.f32.mxu1 %v5311_v0  ;;  %vm6829_vm1 = vcmp.lt.s32.totalorder %v5526_v4, 30  ;;  %vm6831_vm13 = vcmp.lt.s32.totalorder %v5526_v4, 18  ;;  %v5049_v24 = vld [vmem:[%s6563_s3 + $0x1c] sm:$0xf] }
 0x2bf   : > { %5026 = vmatprep.subr.msk.mxu1 %vm5558_vm8, %v2720_v1  ;;  %vm6826_vm8 = vcmp.ge.s32.totalorder %v5530_v6, 2 }
 0x2c0   : > { %5027 = vmatpush1.msk.msra.mxu1 %vm5575_vm11, %v2721_v26  ;;  %vm6827_vm11 = vcmp.lt.s32.totalorder %v5526_v4, 31 }
 0x2c1   : > { %v2887_v12 = vpop.permute.xlu1 %2886  ;;  %v3057_v49 = vpop.permute.xlu0 %3056  ;;  %vm6828_vm3 = vmmov %vm6827_vm11 }
 0x2c2   : > { %v2888_v14 = vsel %vm6823_vm6, %v2885_v30, %v2887_v12  ;;  %v2889_v38 = vsel %vm6825_vm2, %v2887_v12, %v2885_v30  ;;  %vm6834_vm6 = vmmov %vm6831_vm13  ;;  %vm6836_vm2 = vnez %v6664_v59 }
 0x2c3   : > { %5030 = vmatprep.subr.msk.mxu1 %vm6824_vm10, %v2888_v14  ;;  %vm6835_vm10 = vcmp.lt.s32.totalorder %v5526_v4, 17 }
 0x2c5   : > { %5028 = vmatmul.mubr.msk.f32.vlgmr.msra.gmra.mrb[0].mxu1 %vm2735_vm7, %v2724_v36  ;;  %v2973_v13 = vpop.permute.xlu1 %2972  ;;  %v3143_v56 = vpop.permute.xlu0 %3142 }
 0x2c6   : > { %5031 = vmatpush1.msk.msra.mxu1 %vm6826_vm8, %v2889_v38  ;;  %v2974_v15 = vsel %vm6827_vm11, %v2971_v37, %v2973_v13  ;;  %2961 = vmatprep.mubr.f32.mxu1 %v5311_v0  ;;  %v2975_v51 = vsel %vm6828_vm3, %v2973_v13, %v2971_v37  ;;  %vm6837_vm8 = vnez %v6668_v61  ;;  %vm6838_vm11 = vmmov %vm6835_vm10  ;;  %vm6839_vm3 = vcmp.lt.s32.totalorder %v5526_v4, 16  ;;  %v5045_v61 = vld [vmem:[%s6563_s3 + $0x18] sm:$0xf] }
 0x2c7   : > { %5034 = vmatprep.subr.msk.mxu1 %vm5615_vm9, %v2974_v15  ;;  %vm6830_vm9 = vmmov %vm6829_vm1 }
 0x2c9   : > { %v3059_v47 = vpop.permute.xlu1 %3058  ;;  %v3229_v63 = vpop.permute.xlu0 %3228 }
 0x2ca   : > { %v3060_v54 = vsel %vm6829_vm1, %v3057_v49, %v3059_v47  ;;  %v3061_v57 = vsel %vm6830_vm9, %v3059_v47, %v3057_v49  ;;  %vm6840_vm1 = vnez %v6672_v16  ;;  %vm6841_vm9 = vcmp.ge.s32.totalorder %v5535_v8, 1  ;;  %v5065_v49 = vld [vmem:[%s6563_s3 + $0x2c] sm:$0xf] }
 0x2cd   : > { %5032 = vmatmul.mubr.msk.f32.vlgmr.msra.gmra.mrb[0].mxu1 %vm2735_vm7, %v5029_v40  ;;  %v3145_v55 = vpop.permute.xlu1 %3144  ;;  %v3315_v17 = vpop.permute.xlu0 %3314  ;;  %v5061_v40 = vld [vmem:[%s6563_s3 + $0x28] sm:$0xf] }
 0x2ce   : > { %5035 = vmatpush1.msk.msra.mxu1 %vm5636_vm4, %v2975_v51  ;;  %3047 = vmatprep.mubr.f32.mxu1 %v5311_v0  ;;  %v3146_v41 = vsel %vm6831_vm13, %v3143_v56, %v3145_v55  ;;  %vm6832_vm4 = vnez %v6658_v50  ;;  %v3147_v10 = vsel %vm6834_vm6, %v3145_v55, %v3143_v56  ;;  %vm6842_vm13 = vmmov %vm6839_vm3  ;;  %vm6845_vm6 = vnez %v6680_v25  ;;  %v5053_v25 = vld [vmem:[%s6563_s3 + $0x20] sm:$0xf] }
 0x2cf   : > { %5038 = vmatprep.subr.msk.mxu1 %vm5646_vm5, %v3060_v54  ;;  %vm6833_vm5 = vnez %v6660_v52  ;;  %v5041_v52 = vld [vmem:[%s6563_s3 + $0x14] sm:$0xf] }
 0x2d1   : > { %v3231_v60 = vpop.permute.xlu1 %3230  ;;  %v3401_v22 = vpop.permute.xlu0 %3400 }
 0x2d2   : > { %v3232_v50 = vsel %vm6835_vm10, %v3229_v63, %v3231_v60  ;;  %v3233_v18 = vsel %vm6838_vm11, %v3231_v60, %v3229_v63  ;;  %vm6849_vm11 = vnez %v6692_v35  ;;  %v5057_v35 = vld [vmem:[%s6563_s3 + $0x24] sm:$0xf] }
 0x2d5   : > { %5036 = vmatmul.mubr.msk.f32.vlgmr.msra.gmra.mrb[0].mxu1 %vm2735_vm7, %v5033_v34  ;;  %v3317_v11 = vpop.permute.xlu1 %3316  ;;  %v3487_v26 = vpop.permute.xlu0 %3486 }
 0x2d6   : > { %5039 = vmatpush1.msk.msra.mxu1 %vm6832_vm4, %v3061_v57  ;;  %3133 = vmatprep.mubr.f32.mxu1 %v5311_v0  ;;  %v3318_v59 = vsel %vm6839_vm3, %v3315_v17, %v3317_v11  ;;  %v3319_v23 = vsel %vm6842_vm13, %v3317_v11, %v3315_v17  ;;  %vm6843_vm4 = vcmp.lt.s32.totalorder %v5526_v4, 15  ;;  %vm6853_vm13 = vcmp.ge.s32.totalorder %v5537_v9, 2 }
 0x2d7   : > { %5042 = vmatprep.subr.msk.mxu1 %vm6833_vm5, %v3146_v41  ;;  %vm6844_vm5 = vcmp.ge.s32.totalorder %v5530_v6, 1  ;;  %vm6846_vm10 = vmmov %vm6843_vm4 }
 0x2d9   : > { %v3403_v21 = vpop.permute.xlu1 %3402  ;;  %v3573_v36 = vpop.permute.xlu0 %3572 }
 0x2da   : > { %v3404_v16 = vsel %vm6843_vm4, %v3401_v22, %v3403_v21  ;;  %v3405_v30 = vsel %vm6846_vm10, %v3403_v21, %v3401_v22  ;;  %vm6857_vm10 = vcmp.ge.s32.totalorder %v5537_v9, 1 }
 0x2dd   : > { %5040 = vmatmul.mubr.msk.f32.vlgmr.msra.gmra.mrb[0].mxu1 %vm2735_vm7, %v5037_v43  ;;  %v3489_v1 = vpop.permute.xlu1 %3488  ;;  %v3659_v13 = vpop.permute.xlu0 %3658 }
 0x2de   : > { %5043 = vmatpush1.msk.msra.mxu1 %vm6836_vm2, %v3147_v10  ;;  %3219 = vmatprep.mubr.f32.mxu1 %v5311_v0  ;;  %vm6847_vm2 = vcmp.lt.s32.totalorder %v5526_v4, 14 }
 0x2df   : > { %5046 = vmatprep.subr.msk.mxu1 %vm6837_vm8, %v3232_v50  ;;  %v3490_v12 = vsel %vm6847_vm2, %v3487_v26, %v3489_v1  ;;  %vm6848_vm8 = vnez %v6687_v32  ;;  %vm6850_vm3 = vmmov %vm6847_vm2 }
 0x2e0   : > { %v3491_v37 = vsel %vm6850_vm3, %v3489_v1, %v3487_v26  ;;  %vm6861_vm3 = vcmp.lt.s32.totalorder %v5537_v9, 15 }
 0x2e1   : > { %v3575_v14 = vpop.permute.xlu1 %3574  ;;  %v3823_v54 = vpop.permute.xlu0 %3822 }
 0x2e5   : > { %5044 = vmatmul.mubr.msk.f32.vlgmr.msra.gmra.mrb[0].mxu1 %vm2735_vm7, %v5041_v52  ;;  %v3661_v38 = vpop.permute.xlu1 %3660  ;;  %v3909_v56 = vpop.permute.xlu0 %3908 }
 0x2e6   : > { %5047 = vmatpush1.msk.msra.mxu1 %vm6840_vm1, %v3233_v18  ;;  %3305 = vmatprep.mubr.f32.mxu1 %v5311_v0  ;;  %vm6851_vm1 = vcmp.lt.s32.totalorder %v5526_v4, 2 }
 0x2e7   : > { %5050 = vmatprep.subr.msk.mxu1 %vm6841_vm9, %v3318_v59  ;;  %v3576_v32 = vsel %vm6851_vm1, %v3573_v36, %v3575_v14  ;;  %vm6852_vm9 = vnez %v6699_v44  ;;  %vm6854_vm4 = vmmov %vm6851_vm1 }
 0x2e8   : > { %v3577_v15 = vsel %vm6854_vm4, %v3575_v14, %v3573_v36  ;;  %vm6865_vm4 = vcmp.lt.s32.totalorder %v5537_v9, 14  ;;  %v5075_v9 = vld [vmem:[%s6563_s3 + $0x38] sm:$0xf] }
 0x2e9   : > { %v3825_v51 = vpop.permute.xlu1 %3824  ;;  %v3995_v60 = vpop.permute.xlu0 %3994 }
 0x2ed   : > { %5048 = vmatmul.mubr.msk.f32.vlgmr.msra.gmra.mrb[0].mxu1 %vm2735_vm7, %v5045_v61  ;;  %v3911_v55 = vpop.permute.xlu1 %3910  ;;  %v4081_v52 = vpop.permute.xlu0 %4080 }
 0x2ee   : > { %5051 = vmatpush1.msk.msra.mxu1 %vm6844_vm5, %v3319_v23  ;;  %3391 = vmatprep.mubr.f32.mxu1 %v5311_v0  ;;  %vm6855_vm5 = vcmp.lt.s32.totalorder %v5526_v4, 1  ;;  %v5087_v23 = vld [vmem:[%s6563_s3 + $0x44] sm:$0xf] }
 0x2ef   : > { %5054 = vmatprep.subr.msk.mxu1 %vm6845_vm6, %v3404_v16  ;;  %v3662_v44 = vsel %vm6855_vm5, %v3659_v13, %v3661_v38  ;;  %vm6856_vm6 = vcmp.ge.s32.totalorder %v5533_v7, 2  ;;  %vm6858_vm2 = vmmov %vm6855_vm5 }
 0x2f0   : > { %v3663_v47 = vsel %vm6858_vm2, %v3661_v38, %v3659_v13  ;;  %vm6869_vm2 = vnez %v6723_v29  ;;  %v5079_v29 = vld [vmem:[%s6563_s3 + $0x3c] sm:$0xf] }
 0x2f1   : > { %v3997_v43 = vpop.permute.xlu1 %3996  ;;  %v4167_v18 = vpop.permute.xlu0 %4166 }
 0x2f5   : > { %5052 = vmatmul.mubr.msk.f32.vlgmr.msra.gmra.mrb[0].mxu1 %vm2735_vm7, %v5049_v24  ;;  %v4083_v50 = vpop.permute.xlu1 %4082  ;;  %v4253_v21 = vpop.permute.xlu0 %4252 }
 0x2f6   : > { %5055 = vmatpush1.msk.msra.mxu1 %vm6848_vm8, %v3405_v30  ;;  %3477 = vmatprep.mubr.f32.mxu1 %v5311_v0  ;;  %vm6859_vm8 = vcmp.ge.s32.totalorder %v5533_v7, 1 }
 0x2f7   : > { %5058 = vmatprep.subr.msk.mxu1 %vm6849_vm11, %v3490_v12  ;;  %vm6860_vm11 = vcmp.lt.s32.totalorder %v5526_v4, 127 }
 0x2f8   : > { %v3827_v34 = vsel %vm6860_vm11, %v3825_v51, %v3823_v54  ;;  %vm6862_vm1 = vmmov %vm6860_vm11  ;;  %vm6871_vm11 = vcmp.lt.s32.totalorder %v5526_v4, 113 }
 0x2f9   : > { %v3826_v57 = vsel %vm6862_vm1, %v3823_v54, %v3825_v51  ;;  %vm6873_vm1 = vnez %v6735_v42  ;;  %v4169_v17 = vpop.permute.xlu1 %4168  ;;  %v5083_v42 = vld [vmem:[%s6563_s3 + $0x40] sm:$0xf]  ;;  %v4339_v24 = vpop.permute.xlu0 %4338 }
 0x2fd   : > { %5056 = vmatmul.mubr.msk.f32.vlgmr.msra.gmra.mrb[0].mxu1 %vm2735_vm7, %v5053_v25  ;;  %v4255_v61 = vpop.permute.xlu1 %4254  ;;  %v4425_v12 = vpop.permute.xlu0 %4424 }
 0x2fe   : > { %5059 = vmatpush1.msk.msra.mxu1 %vm6852_vm9, %v3491_v37  ;;  %3563 = vmatprep.mubr.f32.mxu1 %v5311_v0  ;;  %vm6863_vm9 = vcmp.lt.s32.totalorder %v5526_v4, 126 }
 0x2ff   : > { %5062 = vmatprep.subr.msk.mxu1 %vm6853_vm13, %v3576_v32  ;;  %v3913_v41 = vsel %vm6863_vm9, %v3911_v55, %v3909_v56  ;;  %vm6864_vm13 = vcmp.lt.s32.totalorder %v5533_v7, 15  ;;  %vm6866_vm5 = vmmov %vm6863_vm9 }
 0x300   : > { %v3912_v63 = vsel %vm6866_vm5, %v3909_v56, %v3911_v55  ;;  %vm6874_vm9 = vmmov %vm6871_vm11  ;;  %vm6877_vm5 = vcmp.lt.s32.totalorder %v5535_v8, 15 }
 0x301   : > { %v4084_v59 = vsel %vm6874_vm9, %v4081_v52, %v4083_v50  ;;  %v4341_v16 = vpop.permute.xlu1 %4340  ;;  %vm6885_vm9 = vnez %v6760_v2  ;;  %v5095_v2 = vld [vmem:[%s6563_s3 + $0x4c] sm:$0xf]  ;;  %v4511_v36 = vpop.permute.xlu0 %4510 }
 0x305   : > { %5060 = vmatmul.mubr.msk.f32.vlgmr.msra.gmra.mrb[0].mxu1 %vm2735_vm7, %v5057_v35  ;;  %v4427_v30 = vpop.permute.xlu1 %4426  ;;  %v4597_v35 = vpop.permute.xlu0 %4596 }
 0x306   : > { %5063 = vmatpush1.msk.msra.mxu1 %vm6856_vm6, %v3577_v15  ;;  %3649 = vmatprep.mubr.f32.mxu1 %v5311_v0  ;;  %vm6867_vm6 = vcmp.lt.s32.totalorder %v5526_v4, 114 }
 0x307   : > { %5066 = vmatprep.subr.msk.mxu1 %vm6857_vm10, %v3662_v44  ;;  %v3999_v10 = vsel %vm6867_vm6, %v3997_v43, %v3995_v60  ;;  %vm6868_vm10 = vcmp.lt.s32.totalorder %v5533_v7, 14  ;;  %v4085_v7 = vsel %vm6871_vm11, %v4083_v50, %v4081_v52 }
 0x309   : > { %v4513_v14 = vpop.permute.xlu1 %4512  ;;  %v4683_v15 = vpop.permute.xlu0 %4682 }
 0x30d   : > { %5064 = vmatmul.mubr.msk.f32.vlgmr.msra.gmra.mrb[0].mxu1 %vm2735_vm7, %v5061_v40  ;;  %v4599_v32 = vpop.permute.xlu1 %4598 }
 0x30e   : > { %5067 = vmatpush1.msk.msra.mxu1 %vm6859_vm8, %v3663_v47  ;;  %3735 = vmatprep.mubr.f32.mxu1 %v5311_v0  ;;  %vm6870_vm8 = vmmov %vm6867_vm6  ;;  %v4769_v47 = vpop.permute.xlu0 %4768 }
 0x30f   : > { %3749 = vmatprep.subr.mxu1 %v6137_v5  ;;  %v5069_v5 = vld [vmem:[%s6563_s3 + $0x30] sm:$0xf]  ;;  %v3998_v11 = vsel %vm6870_vm8, %v3995_v60, %v3997_v43  ;;  %vm6881_vm8 = vnez %v6749_v3  ;;  %v5091_v3 = vld [vmem:[%s6563_s3 + $0x48] sm:$0xf] }
 0x311   : > { %v4685_v13 = vpop.permute.xlu1 %4684 }
 0x315   : > { %5068 = vmatmul.mubr.msk.f32.vlgmr.msra.gmra.mrb[0].mxu1 %vm2735_vm7, %v5065_v49  ;;  %v4771_v40 = vpop.permute.xlu1 %4770 }
 0x316   : > { %3750 = vmatpush1.msra.mxu1 %v6131_v62  ;;  %3813 = vmatprep.mubr.f32.mxu1 %v5311_v0  ;;  %v5071_v62 = vld [vmem:[%s6563_s3 + $0x34] sm:$0xf]  ;;  %v4772_v51 = vsel %vm2611_vm14, %v4769_v47, %v4771_v40 }
 0x317   : > { %5072 = vmatprep.subr.msk.mxu1 %vm6861_vm3, %v3827_v34  ;;  %vm6872_vm3 = vnez %v6730_v39 }
 0x31d   : > { %5070 = vmatmul.mubr.msk.f32.vlgmr.msra.gmra.mrb[0].mxu1 %vm2735_vm7, %v5069_v5 }
 0x31e   : > { %5073 = vmatpush1.msk.msra.mxu1 %vm6864_vm13, %v3826_v57  ;;  %3899 = vmatprep.mubr.f32.mxu1 %v5311_v0  ;;  %vm6875_vm13 = vcmp.lt.s32.totalorder %v5526_v4, 112  ;;  %v4858_v33 = vpop.permute.xlu0 %4857 }
 0x31f   : > { %5076 = vmatprep.subr.msk.mxu1 %vm6865_vm4, %v3913_v41  ;;  %v4171_v39 = vsel %vm6875_vm13, %v4169_v17, %v4167_v18  ;;  %vm6876_vm4 = vnez %v6740_v53  ;;  %vm6878_vm6 = vmmov %vm6875_vm13 }
 0x320   : > { %v4170_v22 = vsel %vm6878_vm6, %v4167_v18, %v4169_v17  ;;  %vm6889_vm6 = vnez %v6771_v31  ;;  %v5099_v31 = vld [vmem:[%s6563_s3 + $0x50] sm:$0xf] }
 0x325   : > { %5074 = vmatmul.mubr.msk.f32.vlgmr.msra.gmra.mrb[0].mxu1 %vm2735_vm7, %v5071_v62 }
 0x326   : > { %5077 = vmatpush1.msk.msra.mxu1 %vm6868_vm10, %v3912_v63  ;;  %3985 = vmatprep.mubr.f32.mxu1 %v5311_v0  ;;  %vm6879_vm10 = vcmp.lt.s32.totalorder %v5526_v4, 111 }
 0x327   : > { %5080 = vmatprep.subr.msk.mxu1 %vm6869_vm2, %v3999_v10  ;;  %v4257_v53 = vsel %vm6879_vm10, %v4255_v61, %v4253_v21  ;;  %vm6880_vm2 = vcmp.lt.s32.totalorder %v5530_v6, 15  ;;  %vm6882_vm11 = vmmov %vm6879_vm10 }
 0x328   : > { %v4256_v1 = vsel %vm6882_vm11, %v4253_v21, %v4255_v61  ;;  %vm6893_vm11 = vnez %v6782_v48  ;;  %v5103_v48 = vld [vmem:[%s6563_s3 + $0x54] sm:$0xf] }
 0x32d   : > { %5078 = vmatmul.mubr.msk.f32.vlgmr.msra.gmra.mrb[0].mxu1 %vm2735_vm7, %v5075_v9 }
 0x32e   : > { %5081 = vmatpush1.msk.msra.mxu1 %vm6872_vm3, %v3998_v11  ;;  %4071 = vmatprep.mubr.f32.mxu1 %v5311_v0  ;;  %vm6883_vm3 = vcmp.lt.s32.totalorder %v5526_v4, 110 }
 0x32f   : > { %5084 = vmatprep.subr.msk.mxu1 %vm6873_vm1, %v4085_v7  ;;  %v4343_v26 = vsel %vm6883_vm3, %v4341_v16, %v4339_v24  ;;  %vm6884_vm1 = vnez %v6755_v20  ;;  %vm6886_vm13 = vmmov %vm6883_vm3 }
 0x330   : > { %v4342_v25 = vsel %vm6886_vm13, %v4339_v24, %v4341_v16  ;;  %vm6897_vm13 = vcmp.lt.s32.totalorder %v5535_v8, 14  ;;  %v5107_v8 = vld [vmem:[%s6563_s3 + $0x58] sm:$0xf] }
 0x335   : > { %5082 = vmatmul.mubr.msk.f32.vlgmr.msra.gmra.mrb[0].mxu1 %vm2735_vm7, %v5079_v29 }
 0x336   : > { %5085 = vmatpush1.msk.msra.mxu1 %vm6876_vm4, %v4084_v59  ;;  %4157 = vmatprep.mubr.f32.mxu1 %v5311_v0  ;;  %vm6887_vm4 = vcmp.lt.s32.totalorder %v5526_v4, 98 }
 0x337   : > { %5088 = vmatprep.subr.msk.mxu1 %vm6877_vm5, %v4171_v39  ;;  %v4429_v20 = vsel %vm6887_vm4, %v4427_v30, %v4425_v12  ;;  %vm6888_vm5 = vnez %v6767_v28  ;;  %vm6890_vm10 = vmmov %vm6887_vm4 }
 0x338   : > { %v4428_v37 = vsel %vm6890_vm10, %v4425_v12, %v4427_v30  ;;  %vm6901_vm10 = vnez %v6796_v19  ;;  %v5111_v19 = vld [vmem:[%s6563_s3 + $0x5c] sm:$0xf] }
 0x33d   : > { %5086 = vmatmul.mubr.msk.f32.vlgmr.msra.gmra.mrb[0].mxu1 %vm2735_vm7, %v5083_v42 }
 0x33e   : > { %5089 = vmatpush1.msk.msra.mxu1 %vm6880_vm2, %v4170_v22  ;;  %4243 = vmatprep.mubr.f32.mxu1 %v5311_v0  ;;  %vm6891_vm2 = vcmp.lt.s32.totalorder %v5526_v4, 97 }
 0x33f   : > { %5092 = vmatprep.subr.msk.mxu1 %vm6881_vm8, %v4257_v53  ;;  %v4515_v28 = vsel %vm6891_vm2, %v4513_v14, %v4511_v36  ;;  %vm6892_vm8 = vnez %v6777_v46  ;;  %vm6894_vm3 = vmmov %vm6891_vm2 }
 0x340   : > { %v4514_v38 = vsel %vm6894_vm3, %v4511_v36, %v4513_v14 }
 0x345   : > { %5090 = vmatmul.mubr.msk.f32.vlgmr.msra.gmra.mrb[0].mxu1 %vm2735_vm7, %v5087_v23 }
 0x346   : > { %5093 = vmatpush1.msk.msra.mxu1 %vm6884_vm1, %v4256_v1  ;;  %4329 = vmatprep.mubr.f32.mxu1 %v5311_v0  ;;  %vm6895_vm1 = vcmp.lt.s32.totalorder %v5526_v4, 96 }
 0x347   : > { %5096 = vmatprep.subr.msk.mxu1 %vm6885_vm9, %v4343_v26  ;;  %v4601_v46 = vsel %vm6895_vm1, %v4599_v32, %v4597_v35  ;;  %vm6896_vm9 = vnez %v6787_v58  ;;  %vm6898_vm4 = vmmov %vm6895_vm1 }
 0x348   : > { %v4600_v44 = vsel %vm6898_vm4, %v4597_v35, %v4599_v32 }
 0x34d   : > { %5094 = vmatmul.mubr.msk.f32.vlgmr.msra.gmra.mrb[0].mxu1 %vm2735_vm7, %v5091_v3 }
 0x34e   : > { %5097 = vmatpush1.msk.msra.mxu1 %vm6888_vm5, %v4342_v25  ;;  %4415 = vmatprep.mubr.f32.mxu1 %v5311_v0  ;;  %vm6899_vm5 = vcmp.lt.s32.totalorder %v5526_v4, 95 }
 0x34f   : > { %5100 = vmatprep.subr.msk.mxu1 %vm6889_vm6, %v4429_v20  ;;  %v4687_v58 = vsel %vm6899_vm5, %v4685_v13, %v4683_v15  ;;  %vm6900_vm6 = vcmp.lt.s32.totalorder %v5530_v6, 14  ;;  %vm6902_vm2 = vmmov %vm6899_vm5  ;;  %v4773_v6 = vsel %vm2611_vm14, %v4771_v40, %v4769_v47 }
 0x350   : > { %v4686_v49 = vsel %vm6902_vm2, %v4683_v15, %v4685_v13 }
 0x355   : > { %5098 = vmatmul.mubr.msk.f32.vlgmr.msra.gmra.mrb[0].mxu1 %vm2735_vm7, %v5095_v2 }
 0x356   : > { %5101 = vmatpush1.msk.msra.mxu1 %vm6892_vm8, %v4428_v37  ;;  %4501 = vmatprep.mubr.f32.mxu1 %v5311_v0 }
 0x357   : > { %5104 = vmatprep.subr.msk.mxu1 %vm6893_vm11, %v4515_v28 }
 0x35d   : > { %5102 = vmatmul.mubr.msk.f32.vlgmr.msra.gmra.mrb[0].mxu1 %vm2735_vm7, %v5099_v31 }
 0x35e   : > { %5105 = vmatpush1.msk.msra.mxu1 %vm6896_vm9, %v4514_v38  ;;  %4587 = vmatprep.mubr.f32.mxu1 %v5311_v0 }
 0x35f   : > { %5108 = vmatprep.subr.msk.mxu1 %vm6897_vm13, %v4601_v46 }
 0x365   : > { %5106 = vmatmul.mubr.msk.f32.vlgmr.msra.gmra.mrb[0].mxu1 %vm2735_vm7, %v5103_v48 }
 0x366   : > { %5109 = vmatpush1.msk.msra.mxu1 %vm6900_vm6, %v4600_v44  ;;  %4673 = vmatprep.mubr.f32.mxu1 %v5311_v0 }
 0x367   : > { %5112 = vmatprep.subr.msk.mxu1 %vm6901_vm10, %v4687_v58 }
 0x36d   : > { %5110 = vmatmul.mubr.msk.f32.vlgmr.msra.gmra.mrb[0].mxu1 %vm2735_vm7, %v5107_v8 }
 0x36e   : > { %5113 = vmatpush1.msk.msra.mxu1 %vm6091_vm12, %v4686_v49  ;;  %4759 = vmatprep.mubr.f32.mxu1 %v5311_v0 }
 0x36f   : > { %5116 = vmatprep.subr.msk.mxu1 %vm6101_vm15, %v4773_v6 }
 0x375   : > { %5114 = vmatmul.mubr.msk.f32.vlgmr.msra.gmra.mrb[0].mxu1 %vm2735_vm7, %v5111_v19 }
 0x376   : > { %5117 = vmatpush1.msk.msra.mxu1 %vm6119_vm0, %v4772_v51  ;;  %4845 = vmatprep.mubr.f32.mxu1 %v5311_v0 }
 0x37d   : > { %5118 = vmatmul.mubr.msk.f32.vlgmr.msra.gmra.mrb[0].mxu1 %vm2735_vm7, %v5115_v27 }
 0x450   : > { %v4847_v54 = vpop.f32.mrb[0].mxu1 }
 0x451   : > { %v4860_v34 = vadd.f32 %v4858_v33, %v4847_v54  ;;  %v4849_v5 = vpop.f32.mrb[1].mxu1 }
 0x452   : > { %v4861_v55 = vadd.f32 %v4858_v33, %v4849_v5 }
 0x453   : > { %v4862_v4 = vmax.f32 %v4860_v34, 0.0 }
 0x454   : > { %v4863_v56 = vmax.f32 %v4861_v55, 0.0 }
 0x456   : > { %v4866_v45 = vcombine.low %v4862_v4, %v4863_v56 }
 0x458   : > { %4868 = vst [vmem:[%s239_s28] sm:$0xff] %v4866_v45 }
 0x459 PF: > { %s16_s18 = sadd.s32 1, %s5306_s18  }
 0x45a   : > { %p13_p3 = scmp.ge.s32.totalorder %s16_s18, 4  }
 0x45c   :  { %15 = sbr.rel (!%p13_p3) target bundleno = 1 (0x1), region = 123 }
 0x463   :  { %4890 = vsyncpa [#allocation3], 1 }
 0x464   :  { %4892 = vsyncpa [#allocation3 + $0x1], 1 }

</bundles_post_ra>
